<compile_context>
chip_gen: v7x
topology: tpu7x:2x2x1
jax: 0.10.0
libtpu: 0.0.40
codegen_flags: <defaults>
</compile_context>

<pallas_src>
import functools

import numpy as np
import jax
import jax.numpy as jnp
from jax.experimental import pallas as pl
from jax.experimental.pallas import tpu as pltpu

LANE = 128


# --------------------------- trace-time weight prep --------------------------

def _banded_conv_matrix(w_oihw, w_in):
    """Banded GEMM matrix for a VALID stride-1 conv on a (H, w_in*IC) row map.

    Returns (KH * w_in * IC, OW * OC) such that, with
      X = concat_di(x[di:di+OH, :], axis=1)   # (OH, KH*w_in*IC)
    X @ band equals the conv output laid out as (OH, OW*OC) (lane = q*OC + o).
    """
    oc, ic, kh, kw = w_oihw.shape
    ow = w_in - kw + 1
    j = np.arange(w_in)[:, None]                       # input width index
    q = np.arange(ow)[None, :]                         # output width index
    dj = j - q                                         # kernel column offset
    valid = ((dj >= 0) & (dj < kw)).astype(np.float32)
    djc = np.clip(dj, 0, kw - 1)
    g = w_oihw[:, :, :, djc] * valid[None, None, None]     # (OC, IC, KH, w_in, OW)
    band = jnp.transpose(g, (2, 3, 1, 4, 0))               # (KH, w_in, IC, OW, OC)
    return band.reshape(kh * w_in * ic, ow * oc)


def _pad_k_blocks(band, kh, k_to):
    """Zero-pad each of the kh K row-blocks up to k_to rows (lane alignment)."""
    k_in = band.shape[0] // kh
    b3 = band.reshape(kh, k_in, band.shape[1])
    b3 = jnp.pad(b3, ((0, 0), (0, k_to - k_in), (0, 0)))
    return b3.reshape(kh * k_to, band.shape[1])


def _pad_cols(a, n_to):
    return jnp.pad(a, ((0, 0), (0, n_to - a.shape[1])))


def _width_pool_matrix(w_in, c):
    """(w_in*c, (w_in//2)*c) 0.5-selection: width half of a 2x2 avg pool."""
    w_out = w_in // 2
    m = (np.arange(w_in)[:, None] // 2 == np.arange(w_out)[None, :])
    m = m.astype(np.float32) * 0.5
    return jnp.asarray(np.kron(m, np.eye(c, dtype=np.float32)))


def _height_pool_matrix(h_in, batch):
    """(batch*h_in//2, batch*h_in) block-diag 0.5-selection: height half of pool."""
    h_out = h_in // 2
    ph = (np.arange(h_in)[None, :] // 2 == np.arange(h_out)[:, None])
    ph = ph.astype(np.float32) * 0.5
    return jnp.asarray(np.kron(np.eye(batch, dtype=np.float32), ph))


def _fold_width_pool(band, kh, pw_padded):
    """Pre-compose a width-pool matrix into each K block of a banded conv."""
    k_in = band.shape[0] // kh
    b3 = band.reshape(kh, k_in, band.shape[1])
    eff = jnp.einsum('mk,dkn->dmn', pw_padded, b3)         # (kh, lanes_in, N)
    return eff.reshape(kh * pw_padded.shape[0], band.shape[1])


# --------------------------- fused kernel ------------------------------------

def _example_net_kernel(x_ref, w1_ref, w2_ref, w3_ref, wfc_ref,
                        ph1_ref, ph2_ref, o_ref, *, batch):
    """B images per grid step; 6 MXU dots total (conv1, hpool1, conv2, hpool2,
    conv3, fc).  All activations stay in (rows, width*channels) lane-dense
    layout with lane widths that are multiples of 128."""
    B = batch
    x = x_ref[...]                                          # (B*32, 128)

    def unfold(rows_all, rows_per_img, kh):
        """Per image: lane-concat of kh sublane-shifted slices; stack over B."""
        oh = rows_per_img - kh + 1
        pieces = []
        for b in range(B):
            img = rows_all[b * rows_per_img:(b + 1) * rows_per_img, :]
            pieces.append(jnp.concatenate(
                [img[di:di + oh, :] for di in range(kh)], axis=1))
        return pieces[0] if B == 1 else jnp.concatenate(pieces, axis=0)

    # conv1 (5x5) + ReLU : (B*28, 640) @ (640, 256)
    x1 = unfold(x, 32, 5)
    a1 = jnp.maximum(
        jnp.dot(x1, w1_ref[...], preferred_element_type=jnp.float32), 0.0)
    # height half of pool1 (width half folded into w2g)
    a1 = jnp.dot(ph1_ref[...], a1, preferred_element_type=jnp.float32)  # (B*14,256)

    # pool1(width) + conv2 (3x3) + ReLU : (B*12, 768) @ (768, 256)
    x2 = unfold(a1, 14, 3)
    a2 = jnp.maximum(
        jnp.dot(x2, w2_ref[...], preferred_element_type=jnp.float32), 0.0)
    a2 = jnp.dot(ph2_ref[...], a2, preferred_element_type=jnp.float32)  # (B*6,256)

    # pool2(width) + conv3 (3x3) + ReLU : (B*4, 768) @ (768, 128)
    x3 = unfold(a2, 6, 3)
    a3 = jnp.maximum(
        jnp.dot(x3, w3_ref[...], preferred_element_type=jnp.float32), 0.0)

    # fc1 (HWC-permuted, zero-padded to 128 output lanes) : (B, 512) @ (512, 128)
    x4 = unfold(a3, 4, 4)                                   # (B, 512)
    o_ref[0] = jnp.dot(x4, wfc_ref[...], preferred_element_type=jnp.float32)


# --------------------------- ExampleNet forward ------------------------------

def _pick_batch_tile(n):
    # >= 2 grid steps when possible (v7x has 2 TensorCores); cap tile at 8.
    cap = min(8, max(1, n // 2))
    for b in range(cap, 0, -1):
        if n % b == 0:
            return b
    return 1


def example_net_forward(x_nchw, params):
    w1, w2, w3, wfc = params
    n, c_in, h_in, w_sp = x_nchw.shape
    w1 = w1.astype(jnp.float32); w2 = w2.astype(jnp.float32)
    w3 = w3.astype(jnp.float32); wfc = wfc.astype(jnp.float32)

    # spatial sizes through the net
    h1 = h_in - w1.shape[2] + 1          # 28
    h1p = h1 // 2                        # 14
    h2 = h1p - w2.shape[2] + 1           # 12
    h2p = h2 // 2                        # 6
    h3 = h2p - w3.shape[2] + 1           # 4

    # ---- input: NCHW -> lane-dense (N*H, W*C) rows, zero-padded to 128 lanes
    x2d = jnp.transpose(x_nchw, (0, 2, 3, 1)).astype(jnp.float32)
    x2d = x2d.reshape(n * h_in, w_sp * c_in)
    x2d = jnp.pad(x2d, ((0, 0), (0, LANE - w_sp * c_in)))               # (N*32, 128)

    # ---- trace-time GEMM weights (constant-folded by XLA) ----
    # conv1: K blocks padded to 128 (matches padded input lanes), N padded to 256.
    w1g = _pad_cols(
        _pad_k_blocks(_banded_conv_matrix(w1, w_sp), w1.shape[2], LANE), 2 * LANE)
    # pool1(width) folded into conv2; N padded to 256.
    pw1 = jnp.pad(_width_pool_matrix(h1, w1.shape[0]),
                  ((0, 2 * LANE - h1 * w1.shape[0]), (0, 0)))           # (256, 112)
    w2g = _pad_cols(
        _fold_width_pool(_banded_conv_matrix(w2, h1p), w2.shape[2], pw1), 2 * LANE)
    # pool2(width) folded into conv3; N is exactly 128 (= 4*32).
    pw2 = jnp.pad(_width_pool_matrix(h2, w2.shape[0]),
                  ((0, 2 * LANE - h2 * w2.shape[0]), (0, 0)))           # (256, 96)
    w3g = _fold_width_pool(_banded_conv_matrix(w3, h2p), w3.shape[2], pw2)
    # fc1: fold PyTorch CHW flatten into an HWC-ordered (512, 10) matrix, pad to 128.
    wfcg = _pad_cols(
        jnp.transpose(wfc.reshape(wfc.shape[0], w3.shape[0], h3, h3),
                      (2, 3, 1, 0)).reshape(h3 * h3 * w3.shape[0], wfc.shape[0]),
        LANE)

    b = _pick_batch_tile(n)
    steps = n // b
    ph1 = _height_pool_matrix(h1, b)                                    # (b*14, b*28)
    ph2 = _height_pool_matrix(h2, b)                                    # (b*6,  b*12)

    kernel = functools.partial(_example_net_kernel, batch=b)
    out = pl.pallas_call(
        kernel,
        out_shape=jax.ShapeDtypeStruct((steps, b, LANE), jnp.float32),
        grid=(steps,),
        in_specs=[
            pl.BlockSpec((b * h_in, LANE), lambda i: (i, 0)),   # B images of rows
            pl.BlockSpec(w1g.shape, lambda i: (0, 0)),          # weights: resident
            pl.BlockSpec(w2g.shape, lambda i: (0, 0)),
            pl.BlockSpec(w3g.shape, lambda i: (0, 0)),
            pl.BlockSpec(wfcg.shape, lambda i: (0, 0)),
            pl.BlockSpec(ph1.shape, lambda i: (0, 0)),
            pl.BlockSpec(ph2.shape, lambda i: (0, 0)),
        ],
        out_specs=pl.BlockSpec((1, b, LANE), lambda i: (i, 0, 0)),
        compiler_params=pltpu.CompilerParams(
            dimension_semantics=("parallel",)),                 # shard steps on v7x TCs
    )(x2d, w1g, w2g, w3g, wfcg, ph1, ph2)

    return out.reshape(n, LANE)[:, :wfc.shape[0]]               # (N, 10)


def ref_forward(x_nchw, params):
    """Pure-JAX reference mirroring the PyTorch forward (for sanity check)."""
    w1, w2, w3, wfc = params
    conv = lambda x, w: jax.lax.conv_general_dilated(
        x, w, (1, 1), 'VALID', dimension_numbers=('NCHW', 'OIHW', 'NCHW'))
    pool = lambda x: jax.lax.reduce_window(
        x, 0.0, jax.lax.add, (1, 1, 2, 2), (1, 1, 2, 2), 'VALID') / 4.0
    out = jax.nn.relu(conv(x_nchw, w1))
    out = pool(out)
    out = jax.nn.relu(conv(out, w2))
    out = pool(out)
    out = jax.nn.relu(conv(out, w3))
    out = out.reshape(out.shape[0], -1)
    return out @ wfc.T


# --------------------------- main ---------------------------------------------

if __name__ == "__main__":
    key = jax.random.PRNGKey(0)
    k_x, k1, k2, k3, k4 = jax.random.split(key, 5)

    # Input: batch=2, CIFAR-like 3x32x32 (required so the 4*4*32 FC matches).
    x = jax.random.normal(k_x, (2, 3, 32, 32), dtype=jnp.float32)

    # Deterministic parameter init (shapes per module __init__, all bias=False).
    w1 = 0.1 * jax.random.normal(k1, (8, 3, 5, 5), dtype=jnp.float32)
    w2 = 0.1 * jax.random.normal(k2, (16, 8, 3, 3), dtype=jnp.float32)
    w3 = 0.1 * jax.random.normal(k3, (32, 16, 3, 3), dtype=jnp.float32)
    wfc = 0.1 * jax.random.normal(k4, (10, 4 * 4 * 32), dtype=jnp.float32)
    params = (w1, w2, w3, wfc)

    fwd = jax.jit(example_net_forward)
    out = jax.block_until_ready(fwd(x, params))
    assert out.shape == (2, 10) and out.dtype == jnp.float32

    ref = jax.block_until_ready(ref_forward(x, params))
    assert jnp.allclose(out, ref, atol=1e-3, rtol=1e-3), "mismatch vs reference"

    print("KERNEL_OK")
</pallas_src>

<mosaic_0001>
module attributes {stable_mosaic.version = 11 : i64} {
  func.func @_example_net_kernel(%arg0: i32, %arg1: memref<32x128xf32, #tpu.memory_space<vmem>>, %arg2: memref<640x256xf32, #tpu.memory_space<vmem>>, %arg3: memref<768x256xf32, #tpu.memory_space<vmem>>, %arg4: memref<768x128xf32, #tpu.memory_space<vmem>>, %arg5: memref<512x128xf32, #tpu.memory_space<vmem>>, %arg6: memref<14x28xf32, #tpu.memory_space<vmem>>, %arg7: memref<6x12xf32, #tpu.memory_space<vmem>>, %arg8: memref<1x1x128xf32, #tpu.memory_space<vmem>>) attributes {dimension_semantics = [#tpu.dimension_semantics<parallel>], iteration_bounds = array<i64: 2>, scalar_prefetch = 0 : i64, scratch_operands = 0 : i64, tpu.core_type = #tpu.core_type<tc>, window_params = [{transform_indices = @transform_0, window_bounds = array<i64: 32, 128>}, {pipeline_mode = #tpu.pipeline_mode<synchronous>, transform_indices = @transform_1, window_bounds = array<i64: 640, 256>}, {pipeline_mode = #tpu.pipeline_mode<synchronous>, transform_indices = @transform_2, window_bounds = array<i64: 768, 256>}, {pipeline_mode = #tpu.pipeline_mode<synchronous>, transform_indices = @transform_3, window_bounds = array<i64: 768, 128>}, {pipeline_mode = #tpu.pipeline_mode<synchronous>, transform_indices = @transform_4, window_bounds = array<i64: 512, 128>}, {pipeline_mode = #tpu.pipeline_mode<synchronous>, transform_indices = @transform_5, window_bounds = array<i64: 14, 28>}, {pipeline_mode = #tpu.pipeline_mode<synchronous>, transform_indices = @transform_6, window_bounds = array<i64: 6, 12>}, {transform_indices = @transform_7, window_bounds = array<i64: 1, 1, 128>}]} {
    %c0 = arith.constant 0 : index
    %c0_0 = arith.constant 0 : index
    %0 = vector.load %arg1[%c0, %c0_0] : memref<32x128xf32, #tpu.memory_space<vmem>>, vector<32x128xf32>
    %1 = vector.extract_strided_slice %0 {offsets = [0, 0], sizes = [28, 128], strides = [1, 1]} : vector<32x128xf32> to vector<28x128xf32>
    %2 = vector.extract_strided_slice %0 {offsets = [1, 0], sizes = [28, 128], strides = [1, 1]} : vector<32x128xf32> to vector<28x128xf32>
    %3 = vector.extract_strided_slice %0 {offsets = [2, 0], sizes = [28, 128], strides = [1, 1]} : vector<32x128xf32> to vector<28x128xf32>
    %4 = vector.extract_strided_slice %0 {offsets = [3, 0], sizes = [28, 128], strides = [1, 1]} : vector<32x128xf32> to vector<28x128xf32>
    %5 = vector.extract_strided_slice %0 {offsets = [4, 0], sizes = [28, 128], strides = [1, 1]} : vector<32x128xf32> to vector<28x128xf32>
    %6 = tpu.concatenate %1, %2, %3, %4, %5 in 1 : vector<28x128xf32>, vector<28x128xf32>, vector<28x128xf32>, vector<28x128xf32>, vector<28x128xf32> -> vector<28x640xf32>
    %c0_1 = arith.constant 0 : index
    %c0_2 = arith.constant 0 : index
    %7 = vector.load %arg2[%c0_1, %c0_2] : memref<640x256xf32, #tpu.memory_space<vmem>>, vector<640x256xf32>
    %cst = arith.constant dense<0.000000e+00> : vector<28x256xf32>
    %8 = tpu.matmul %6, %7, %cst {dimension_numbers = #tpu.dot_dimension_numbers<[1], [0], [0], [1], [0, 0, 1, 1], [], []>} : vector<28x640xf32>, vector<640x256xf32>, vector<28x256xf32> -> vector<28x256xf32>
    %cst_3 = arith.constant 0.000000e+00 : f32
    %9 = vector.broadcast %cst_3 : f32 to vector<28x256xf32>
    %10 = arith.maximumf %8, %9 : vector<28x256xf32>
    %c0_4 = arith.constant 0 : index
    %c0_5 = arith.constant 0 : index
    %11 = vector.load %arg6[%c0_4, %c0_5] : memref<14x28xf32, #tpu.memory_space<vmem>>, vector<14x28xf32>
    %cst_6 = arith.constant dense<0.000000e+00> : vector<14x256xf32>
    %12 = tpu.matmul %11, %10, %cst_6 {dimension_numbers = #tpu.dot_dimension_numbers<[1], [0], [0], [1], [0, 0, 1, 1], [], []>} : vector<14x28xf32>, vector<28x256xf32>, vector<14x256xf32> -> vector<14x256xf32>
    %13 = vector.extract_strided_slice %12 {offsets = [0, 0], sizes = [12, 256], strides = [1, 1]} : vector<14x256xf32> to vector<12x256xf32>
    %14 = vector.extract_strided_slice %12 {offsets = [1, 0], sizes = [12, 256], strides = [1, 1]} : vector<14x256xf32> to vector<12x256xf32>
    %15 = vector.extract_strided_slice %12 {offsets = [2, 0], sizes = [12, 256], strides = [1, 1]} : vector<14x256xf32> to vector<12x256xf32>
    %16 = tpu.concatenate %13, %14, %15 in 1 : vector<12x256xf32>, vector<12x256xf32>, vector<12x256xf32> -> vector<12x768xf32>
    %c0_7 = arith.constant 0 : index
    %c0_8 = arith.constant 0 : index
    %17 = vector.load %arg3[%c0_7, %c0_8] : memref<768x256xf32, #tpu.memory_space<vmem>>, vector<768x256xf32>
    %cst_9 = arith.constant dense<0.000000e+00> : vector<12x256xf32>
    %18 = tpu.matmul %16, %17, %cst_9 {dimension_numbers = #tpu.dot_dimension_numbers<[1], [0], [0], [1], [0, 0, 1, 1], [], []>} : vector<12x768xf32>, vector<768x256xf32>, vector<12x256xf32> -> vector<12x256xf32>
    %cst_10 = arith.constant 0.000000e+00 : f32
    %19 = vector.broadcast %cst_10 : f32 to vector<12x256xf32>
    %20 = arith.maximumf %18, %19 : vector<12x256xf32>
    %c0_11 = arith.constant 0 : index
    %c0_12 = arith.constant 0 : index
    %21 = vector.load %arg7[%c0_11, %c0_12] : memref<6x12xf32, #tpu.memory_space<vmem>>, vector<6x12xf32>
    %cst_13 = arith.constant dense<0.000000e+00> : vector<6x256xf32>
    %22 = tpu.matmul %21, %20, %cst_13 {dimension_numbers = #tpu.dot_dimension_numbers<[1], [0], [0], [1], [0, 0, 1, 1], [], []>} : vector<6x12xf32>, vector<12x256xf32>, vector<6x256xf32> -> vector<6x256xf32>
    %23 = vector.extract_strided_slice %22 {offsets = [0, 0], sizes = [4, 256], strides = [1, 1]} : vector<6x256xf32> to vector<4x256xf32>
    %24 = vector.extract_strided_slice %22 {offsets = [1, 0], sizes = [4, 256], strides = [1, 1]} : vector<6x256xf32> to vector<4x256xf32>
    %25 = vector.extract_strided_slice %22 {offsets = [2, 0], sizes = [4, 256], strides = [1, 1]} : vector<6x256xf32> to vector<4x256xf32>
    %26 = tpu.concatenate %23, %24, %25 in 1 : vector<4x256xf32>, vector<4x256xf32>, vector<4x256xf32> -> vector<4x768xf32>
    %c0_14 = arith.constant 0 : index
    %c0_15 = arith.constant 0 : index
    %27 = vector.load %arg4[%c0_14, %c0_15] : memref<768x128xf32, #tpu.memory_space<vmem>>, vector<768x128xf32>
    %cst_16 = arith.constant dense<0.000000e+00> : vector<4x128xf32>
    %28 = tpu.matmul %26, %27, %cst_16 {dimension_numbers = #tpu.dot_dimension_numbers<[1], [0], [0], [1], [0, 0, 1, 1], [], []>} : vector<4x768xf32>, vector<768x128xf32>, vector<4x128xf32> -> vector<4x128xf32>
    %cst_17 = arith.constant 0.000000e+00 : f32
    %29 = vector.broadcast %cst_17 : f32 to vector<4x128xf32>
    %30 = arith.maximumf %28, %29 : vector<4x128xf32>
    %31 = vector.extract_strided_slice %30 {offsets = [0, 0], sizes = [1, 128], strides = [1, 1]} : vector<4x128xf32> to vector<1x128xf32>
    %32 = vector.extract_strided_slice %30 {offsets = [1, 0], sizes = [1, 128], strides = [1, 1]} : vector<4x128xf32> to vector<1x128xf32>
    %33 = vector.extract_strided_slice %30 {offsets = [2, 0], sizes = [1, 128], strides = [1, 1]} : vector<4x128xf32> to vector<1x128xf32>
    %34 = vector.extract_strided_slice %30 {offsets = [3, 0], sizes = [1, 128], strides = [1, 1]} : vector<4x128xf32> to vector<1x128xf32>
    %35 = tpu.concatenate %31, %32, %33, %34 in 1 : vector<1x128xf32>, vector<1x128xf32>, vector<1x128xf32>, vector<1x128xf32> -> vector<1x512xf32>
    %c0_18 = arith.constant 0 : index
    %c0_19 = arith.constant 0 : index
    %36 = vector.load %arg5[%c0_18, %c0_19] : memref<512x128xf32, #tpu.memory_space<vmem>>, vector<512x128xf32>
    %cst_20 = arith.constant dense<0.000000e+00> : vector<1x128xf32>
    %37 = tpu.matmul %35, %36, %cst_20 {dimension_numbers = #tpu.dot_dimension_numbers<[1], [0], [0], [1], [0, 0, 1, 1], [], []>} : vector<1x512xf32>, vector<512x128xf32>, vector<1x128xf32> -> vector<1x128xf32>
    %c0_21 = arith.constant 0 : index
    %c0_22 = arith.constant 0 : index
    %c0_23 = arith.constant 0 : index
    %38 = vector.load %arg8[%c0_21, %c0_22, %c0_23] : memref<1x1x128xf32, #tpu.memory_space<vmem>>, vector<1x1x128xf32>
    %39 = vector.shape_cast %38 : vector<1x1x128xf32> to vector<1x128xf32>
    %40 = vector.shape_cast %37 : vector<1x128xf32> to vector<1x1x128xf32>
    tpu.vector_store %arg8[%c0_21, %c0_22, %c0_23], %40 {strides = array<i32>} : memref<1x1x128xf32, #tpu.memory_space<vmem>>, vector<1x1x128xf32>,
    return
  }
  func.func @transform_0(%arg0: i32) -> (i32, i32) {
    %c0_i32 = arith.constant 0 : i32
    %c0_i32_0 = arith.constant 0 : i32
    return %arg0, %c0_i32 : i32, i32
  }
  func.func @transform_1(%arg0: i32) -> (i32, i32) {
    %c0_i32 = arith.constant 0 : i32
    %c0_i32_0 = arith.constant 0 : i32
    %c0_i32_1 = arith.constant 0 : i32
    return %c0_i32, %c0_i32_0 : i32, i32
  }
  func.func @transform_2(%arg0: i32) -> (i32, i32) {
    %c0_i32 = arith.constant 0 : i32
    %c0_i32_0 = arith.constant 0 : i32
    %c0_i32_1 = arith.constant 0 : i32
    return %c0_i32, %c0_i32_0 : i32, i32
  }
  func.func @transform_3(%arg0: i32) -> (i32, i32) {
    %c0_i32 = arith.constant 0 : i32
    %c0_i32_0 = arith.constant 0 : i32
    %c0_i32_1 = arith.constant 0 : i32
    return %c0_i32, %c0_i32_0 : i32, i32
  }
  func.func @transform_4(%arg0: i32) -> (i32, i32) {
    %c0_i32 = arith.constant 0 : i32
    %c0_i32_0 = arith.constant 0 : i32
    %c0_i32_1 = arith.constant 0 : i32
    return %c0_i32, %c0_i32_0 : i32, i32
  }
  func.func @transform_5(%arg0: i32) -> (i32, i32) {
    %c0_i32 = arith.constant 0 : i32
    %c0_i32_0 = arith.constant 0 : i32
    %c0_i32_1 = arith.constant 0 : i32
    return %c0_i32, %c0_i32_0 : i32, i32
  }
  func.func @transform_6(%arg0: i32) -> (i32, i32) {
    %c0_i32 = arith.constant 0 : i32
    %c0_i32_0 = arith.constant 0 : i32
    %c0_i32_1 = arith.constant 0 : i32
    return %c0_i32, %c0_i32_0 : i32, i32
  }
  func.func @transform_7(%arg0: i32) -> (i32, i32, i32) {
    %c0_i32 = arith.constant 0 : i32
    %c0_i32_0 = arith.constant 0 : i32
    %c0_i32_1 = arith.constant 0 : i32
    return %arg0, %c0_i32, %c0_i32_0 : i32, i32, i32
  }
}

</mosaic_0001>

<bundles_post_ra>
// kernel: example_net_forward.1
= control target key start
LH: loop header
LB: loop body
LE: loop exit
PB: predicated region body
PF: predicated region fallthrough
CT: control target
= control target key end

     0   :  { %12 = vsyncpa [#allocation3], 0  ;;  %s4683_s0 = inlined_call_operand.vmem [shape: f32[64,128], index: 0, kind: input, shape index: {}]   ;;  %s4684_s1 = inlined_call_operand.vmem [shape: f32[640,256], index: 1, kind: input, shape index: {}]   ;;  %s4685_s2 = inlined_call_operand.vmem [shape: f32[768,256], index: 2, kind: input, shape index: {}]   ;;  %s4686_s3 = inlined_call_operand.vmem [shape: f32[768,128], index: 3, kind: input, shape index: {}]   ;;  %s4687_s4 = inlined_call_operand.vmem [shape: f32[512,128], index: 4, kind: input, shape index: {}]   ;;  %s4688_s5 = inlined_call_operand.vmem [shape: f32[14,28], index: 5, kind: input, shape index: {}]   ;;  %s4689_s6 = inlined_call_operand.vmem [shape: f32[6,12], index: 6, kind: input, shape index: {}]   ;;  %s4690_s7 = inlined_call_operand.hbm [shape: f32[2,1,128], index: 7, kind: output, shape index: {}]  }
   0x1   :  { %14 = vsyncpa [#allocation3 + $0x1], 0  ;;  %s2882_s24 = smov 0   ;;  %s2884_s25 = smov 0  }
   0x2   :  { %s2886_s26 = smov 0   ;;  %s2888_s27 = smov 0  }
   0x3 LB: > { %s2903_s28 = sadd.s32 4294967295, %s2837_s27   ;;  %s1991_s29 = sadd.s32 4294967294, %s2837_s27   ;;  %s2837_s27 = sphi %s2888_s27, %s4698_s27   ;;  %s2833_s26 = sphi %s2886_s26, %s4697_s26   ;;  %s2829_s25 = sphi %s2884_s25, %s4696_s25   ;;  %s2825_s24 = sphi %s2882_s24, %s4695_s24  }
   0x4   : > { %s2907_s30 = sadd.s32 1, %s2837_s27   ;;  %s179_s8 = sadd.s32 1, %s2833_s26 }
   0x5   : > { %s176_s9 = ssub.s32 %s2837_s27, %s2907_s30  ;;  %p189_p0 = scmp.ne.s32.totalorder %s2833_s26, %s2829_s25 }
   0x6   : > { %p177_p1 = scmp.eq.s32.totalorder %s176_s9, 0  ;;  %p190_p2 = scmp.eq.s32.totalorder %s2903_s28, 1 }
   0x7   : > { %p195_p3 = scmp.ne.s32.totalorder %s2829_s25, %s2825_s24  ;;  %p196_p4 = scmp.eq.s32.totalorder %s1991_s29, 1 }
   0x8   : > { %s2918_s10 = scalar_select %p177_p1, %s2833_s26, %s179_s8  }
   0x9   : > { %p2920_p5 = por %p190_p2, %p189_p0  ;;  %p2924_p6 = por %p196_p4, %p195_p3 }
   0xa   : > { %p1994_p7 = scmp.ge.s32.totalorder %s2837_s27, 1  ;;  %p241_p8 = scmp.lt.s32.totalorder %s2837_s27, 3 }
   0xc   : > { %p242_p9 = pnand %p1994_p7, %p241_p8 }
   0xd   : > { %v335_v0 = vld [vmem:[%s4684_s1 + $0x8] sm:$0xff] (!%p242_p9)  ;;  %v337_v1 = vld [vmem:[%s4684_s1 + $0x18] sm:$0xff] (!%p242_p9)  ;;  %v334_v2 = vld [vmem:[%s4684_s1] sm:$0xff] (!%p242_p9)  ;;  %s1995_s19 = sshll.u32 (!%p242_p9), %s2903_s28, 2  ;;  %vm286_vm0 = vcmask (!%p242_p9), 1046528   ;;  %vm298_vm1 = vcmask (!%p242_p9), 1045504  }
   0xe   : > { %245 = sbr.rel (%p242_p9) target bundleno = 1675 (0x68b), region = 48  ;;  %v2182_v3 = vpack.c.bf16 (!%p242_p9), %v337_v1, %v335_v0  ;;  %v336_v4 = vld [vmem:[%s4684_s1 + $0x10] sm:$0xff] (!%p242_p9)  ;;  %v339_v5 = vld [vmem:[%s4684_s1 + $0x28] sm:$0xff] (!%p242_p9)  ;;  %v341_v6 = vld [vmem:[%s4684_s1 + $0x38] sm:$0xff] (!%p242_p9)  ;;  %p273_p10 = scmp.lt.s32.totalorder (!%p242_p9), %s1995_s19, 7  ;;  %vm322_vm2 = vcmask (!%p242_p9), 1043456  }
   0xf   : > { %v2184_v7 = vpack.c.bf16 (!%p242_p9), %v336_v4, %v334_v2  ;;  %v2186_v8 = vpack.c.bf16 (!%p242_p9), %v341_v6, %v339_v5  ;;  %v338_v9 = vld [vmem:[%s4684_s1 + $0x20] sm:$0xff] (!%p242_p9)  ;;  %v340_v10 = vld [vmem:[%s4684_s1 + $0x30] sm:$0xff] (!%p242_p9)  ;;  %v343_v11 = vld [vmem:[%s4684_s1 + $0x48] sm:$0xff] (!%p242_p9)  ;;  %v2839_v5 = vmov (!%p242_p9), 0.0   ;;  %vm310_vm3 = vcmask (!%p242_p9), 1044480   ;;  %s270_s16 = sand.u32 (!%p242_p9), 1, %s2829_s25  }
  0x10   : > { %2183 = vmatprep.subr.bf16.mxu0 (!%p242_p9), %v2182_v3  ;;  %v345_v12 = vld [vmem:[%s4684_s1 + $0x58] sm:$0xff] (!%p242_p9)  ;;  %v2188_v13 = vpack.c.bf16 (!%p242_p9), %v340_v10, %v338_v9  ;;  %v342_v15 = vld [vmem:[%s4684_s1 + $0x40] sm:$0xff] (!%p242_p9)  ;;  %v344_v16 = vld [vmem:[%s4684_s1 + $0x50] sm:$0xff] (!%p242_p9)  ;;  %848 = vmatprep.mubr.f32.mxu1 (!%p242_p9), %v2839_v5  ;;  %vm2840_vm4 = vmmov (!%p242_p9), 1   ;;  %vm771_vm6 = vcmask (!%p242_p9), 228352   ;;  %vm1313_vm7 = vcmask (!%p242_p9), 97280  }
  0x11   : > { %2185 = vmatpush1.bf16.msra.mxu0 (!%p242_p9), %v2184_v7  ;;  %v2190_v14 = vpack.c.bf16 (!%p242_p9), %v345_v12, %v343_v11  ;;  %v347_v17 = vld [vmem:[%s4684_s1 + $0x68] sm:$0xff] (!%p242_p9)  ;;  %v349_v18 = vld [vmem:[%s4684_s1 + $0x78] sm:$0xff] (!%p242_p9)  ;;  %v2192_v19 = vpack.c.bf16 (!%p242_p9), %v344_v16, %v342_v15  ;;  %v346_v21 = vld [vmem:[%s4684_s1 + $0x60] sm:$0xff] (!%p242_p9)  ;;  %s2004_s18 = sshll.u32 (!%p242_p9), %s2903_s28, 4  ;;  %s271_s20 = scalar_lea.vmem (!%p242_p9), [#allocation2], %s270_s16 }
  0x12   : > { %2187 = vmatprep.subr.bf16.mxu0 (!%p242_p9), %v2186_v8  ;;  %v2194_v20 = vpack.c.bf16 (!%p242_p9), %v349_v18, %v347_v17  ;;  %v348_v22 = vld [vmem:[%s4684_s1 + $0x70] sm:$0xff] (!%p242_p9)  ;;  %v351_v23 = vld [vmem:[%s4684_s1 + $0x88] sm:$0xff] (!%p242_p9)  ;;  %v353_v24 = vld [vmem:[%s4684_s1 + $0x98] sm:$0xff] (!%p242_p9)  ;;  %s4641_s23 = scalar_lea.hbm (!%p242_p9), %s4690_s7, %s2004_s18  ;;  %s1924_s29 = scalar_lea.sflag (!%p242_p9), [#allocation3], %s270_s16 }
  0x13   : > { %v2196_v25 = vpack.c.bf16 (!%p242_p9), %v348_v22, %v346_v21  ;;  %v2198_v26 = vpack.c.bf16 (!%p242_p9), %v353_v24, %v351_v23  ;;  %v350_v27 = vld [vmem:[%s4684_s1 + $0x80] sm:$0xff] (!%p242_p9)  ;;  %v352_v28 = vld [vmem:[%s4684_s1 + $0x90] sm:$0xff] (!%p242_p9)  ;;  %v355_v29 = vld [vmem:[%s4684_s1 + $0xa8] sm:$0xff] (!%p242_p9)  ;;  %s2841_s28 = smov (!%p242_p9), [#allocation2]  }
  0x14   : > { %v357_v30 = vld [vmem:[%s4684_s1 + $0xb8] sm:$0xff] (!%p242_p9)  ;;  %v2200_v31 = vpack.c.bf16 (!%p242_p9), %v352_v28, %v350_v27  ;;  %v354_v33 = vld [vmem:[%s4684_s1 + $0xa0] sm:$0xff] (!%p242_p9)  ;;  %v356_v34 = vld [vmem:[%s4684_s1 + $0xb0] sm:$0xff] (!%p242_p9) }
  0x15   : > { %2189 = vmatpush1.bf16.msra.mxu0 %v2188_v13  ;;  %s4700_s19 = smov (!%p273_p10, %s1995_s19), 7  ;;  %v2202_v32 = vpack.c.bf16 %v357_v30, %v355_v29  ;;  %v359_v35 = vld [vmem:[%s4684_s1 + $0xc8] sm:$0xff]  ;;  %v361_v36 = vld [vmem:[%s4684_s1 + $0xd8] sm:$0xff]  ;;  %v2204_v37 = vpack.c.bf16 %v356_v34, %v354_v33  ;;  %v358_v38 = vld [vmem:[%s4684_s1 + $0xc0] sm:$0xff] }
  0x16   : > { %2191 = vmatprep.subr.bf16.mxu0 %v2190_v14  ;;  %s1996_s17 = sshll.u32 %s4700_s19, 3  ;;  %v2206_v39 = vpack.c.bf16 %v361_v36, %v359_v35  ;;  %v360_v40 = vld [vmem:[%s4684_s1 + $0xd0] sm:$0xff]  ;;  %v363_v43 = vld [vmem:[%s4684_s1 + $0xe8] sm:$0xff]  ;;  %v365_v44 = vld [vmem:[%s4684_s1 + $0xf8] sm:$0xff] }
  0x17   : > { %s3012_s14 = scalar_lea.vmem %s4683_s0, %s1996_s17  ;;  %v2208_v49 = vpack.c.bf16 %v360_v40, %v358_v38  ;;  %v2210_v51 = vpack.c.bf16 %v365_v44, %v363_v43  ;;  %v362_v52 = vld [vmem:[%s4684_s1 + $0xe0] sm:$0xff]  ;;  %v364_v53 = vld [vmem:[%s4684_s1 + $0xf0] sm:$0xff]  ;;  %v367_v55 = vld [vmem:[%s4684_s1 + $0x108] sm:$0xff]  ;;  %s1936_s17 = sshll.u32 %s271_s20, 4  ;;  %s4643_s17 = int_to_ptr.vmem [resolvable:$true] %s1936_s17 }
  0x18   : > { %v3021_v41 = vld [vmem:[%s3012_s14] sm:$0xff]  ;;  %v3024_v42 = vld [vmem:[%s3012_s14 + $0x8] sm:$0xff]  ;;  %v369_v56 = vld [vmem:[%s4684_s1 + $0x118] sm:$0xff]  ;;  %v2212_v57 = vpack.c.bf16 %v364_v53, %v362_v52  ;;  %s2775_s8 = scalar_lea.vmem %s4643_s17, 16 }
  0x19   : > { %2193 = vmatpush1.bf16.msra.mxu0 %v2192_v19  ;;  %v287_v45 = vrot.slane %v3021_v41, 1  ;;  %v288_v46 = vrot.slane %v3024_v42, 1  ;;  %v299_v47 = vrot.slane %v3021_v41, 2  ;;  %v300_v48 = vrot.slane %v3024_v42, 2  ;;  %v366_v59 = vld [vmem:[%s4684_s1 + $0x100] sm:$0xff]  ;;  %v368_v60 = vld [vmem:[%s4684_s1 + $0x110] sm:$0xff]  ;;  %vm3518_vm5 = vmpackc.low %vm322_vm2, %vm2840_vm4  ;;  %p2776_p11 = scmp.ne.s32.totalorder %s4643_s17, %s2775_s8 }
  0x1a   : > { %2195 = vmatprep.subr.bf16.mxu0 %v2194_v20  ;;  %v2214_v58 = vpack.c.bf16 %v369_v56, %v367_v55  ;;  %v371_v61 = vld [vmem:[%s4684_s1 + $0x128] sm:$0xff]  ;;  %v373_v62 = vld [vmem:[%s4684_s1 + $0x138] sm:$0xff]  ;;  %v2216_v63 = vpack.c.bf16 %v368_v60, %v366_v59  ;;  %v370_v1 = vld [vmem:[%s4684_s1 + $0x120] sm:$0xff]  ;;  %v323_v3 = vrot.slane %v3021_v41, 4  ;;  %v324_v4 = vrot.slane %v3024_v42, 4 }
  0x1b   : > { %v289_v50 = vsel %vm286_vm0, %v287_v45, %v288_v46  ;;  %v3046_v54 = vsel %vm298_vm1, %v299_v47, %v300_v48  ;;  %v2218_v0 = vpack.c.bf16 %v373_v62, %v371_v61  ;;  %v372_v2 = vld [vmem:[%s4684_s1 + $0x130] sm:$0xff]  ;;  %v375_v6 = vld [vmem:[%s4684_s1 + $0x148] sm:$0xff]  ;;  %v377_v7 = vld [vmem:[%s4684_s1 + $0x158] sm:$0xff]  ;;  %p2777_p12 = pnand %p2776_p11, %p2920_p5 }
  0x1c   : > { %558 = vmatprep.mubr.f32.mxu0 %v289_v50  ;;  %v3082_v8 = vsel %vm322_vm2, %v323_v3, %v324_v4  ;;  %v2220_v9 = vpack.c.bf16 %v372_v2, %v370_v1  ;;  %v2222_v10 = vpack.c.bf16 %v377_v7, %v375_v6  ;;  %v374_v11 = vld [vmem:[%s4684_s1 + $0x140] sm:$0xff]  ;;  %v376_v12 = vld [vmem:[%s4684_s1 + $0x150] sm:$0xff]  ;;  %v379_v13 = vld [vmem:[%s4684_s1 + $0x168] sm:$0xff] }
  0x1d   : > { %2197 = vmatpush1.bf16.msra.mxu0 %v2196_v25  ;;  %v381_v14 = vld [vmem:[%s4684_s1 + $0x178] sm:$0xff]  ;;  %v3097_v15 = vld [vmem:[%s3012_s14 + $0x10] sm:$0xff]  ;;  %v2224_v16 = vpack.c.bf16 %v376_v12, %v374_v11  ;;  %v378_v19 = vld [vmem:[%s4684_s1 + $0x160] sm:$0xff]  ;;  %p2778_p13 = pneg %p2777_p12 }
  0x1e   : > { %2199 = vmatprep.subr.bf16.mxu0 %v2198_v26  ;;  %v302_v17 = vrot.slane %v3097_v15, 2  ;;  %v2226_v18 = vpack.c.bf16 %v381_v14, %v379_v13  ;;  %v380_v20 = vld [vmem:[%s4684_s1 + $0x170] sm:$0xff]  ;;  %v326_v21 = vrot.slane %v3097_v15, 4  ;;  %v383_v22 = vld [vmem:[%s4684_s1 + $0x188] sm:$0xff]  ;;  %v385_v23 = vld [vmem:[%s4684_s1 + $0x198] sm:$0xff]  ;;  %v314_v25 = vrot.slane %v3097_v15, 3 }
  0x1f   : > { %v3114_v24 = vld [vmem:[%s3012_s14 + $0x18] sm:$0xff]  ;;  %v2228_v29 = vpack.c.bf16 %v380_v20, %v378_v19  ;;  %v384_v33 = vld [vmem:[%s4684_s1 + $0x190] sm:$0xff]  ;;  %v386_v44 = vld [vmem:[%s4684_s1 + $0x1a0] sm:$0xff]  ;;  %v290_v2 = vrot.slane %v3097_v15, 1  ;;  %s2779_s14 = sshll.u32 %s2841_s28, 4  ;;  %s2780_s14 = int_to_ptr.vmem [resolvable:$false] %s2779_s14 }
  0x20   : > { %v3118_v26 = vsel %vm298_vm1, %v300_v48, %v302_v17  ;;  %v316_v27 = vrot.slane %v3114_v24, 3  ;;  %v304_v28 = vrot.slane %v3114_v24, 2  ;;  %v3123_v30 = vsel %vm322_vm2, %v324_v4, %v326_v21  ;;  %v389_v38 = vld [vmem:[%s4684_s1 + $0x1b8] sm:$0xff]  ;;  %v388_v45 = vld [vmem:[%s4684_s1 + $0x1b0] sm:$0xff]  ;;  %v391_v47 = vld [vmem:[%s4684_s1 + $0x1c8] sm:$0xff]  ;;  %s2781_s9 = scalar_lea.vmem %s2780_s14, 32  ;;  %p2782_p0 = scmp.lt.s32.totalorder %s4643_s17, %s2780_s14 }
  0x21   : > { %2201 = vmatpush1.bf16.msra.mxu0 %v2200_v31  ;;  %v2230_v31 = vpack.c.bf16 %v385_v23, %v383_v22  ;;  %v328_v36 = vrot.slane %v3114_v24, 4  ;;  %v393_v48 = vld [vmem:[%s4684_s1 + $0x1d8] sm:$0xff]  ;;  %v392_v52 = vld [vmem:[%s4684_s1 + $0x1d0] sm:$0xff]  ;;  %v395_v53 = vld [vmem:[%s4684_s1 + $0x1e8] sm:$0xff]  ;;  %v291_v11 = vsel %vm286_vm0, %v288_v46, %v290_v2  ;;  %v292_v12 = vrot.slane %v3114_v24, 1  ;;  %p2783_p1 = scmp.lt.s32.totalorder %s2781_s9, %s2775_s8 }
  0x22   : > { %2203 = vmatprep.subr.bf16.mxu0 %v2202_v32  ;;  %v382_v32 = vld [vmem:[%s4684_s1 + $0x180] sm:$0xff]  ;;  %v3136_v34 = vsel %vm310_vm3, %v314_v25, %v316_v27  ;;  %v3141_v35 = vsel %vm298_vm1, %v302_v17, %v304_v28  ;;  %v2238_v50 = vpack.c.bf16 %v393_v48, %v391_v47  ;;  %v397_v55 = vld [vmem:[%s4684_s1 + $0x1f8] sm:$0xff]  ;;  %v396_v59 = vld [vmem:[%s4684_s1 + $0x1f0] sm:$0xff] }
  0x23   : > { %v2232_v40 = vpack.c.bf16 %v384_v33, %v382_v32  ;;  %v399_v60 = vld [vmem:[%s4684_s1 + $0x208] sm:$0xff]  ;;  %v401_v61 = vld [vmem:[%s4684_s1 + $0x218] sm:$0xff]  ;;  %v400_v1 = vld [vmem:[%s4684_s1 + $0x210] sm:$0xff]  ;;  %v293_v19 = vsel %vm286_vm0, %v290_v2, %v292_v12  ;;  %v311_v32 = vrot.slane %v3021_v41, 3  ;;  %v312_v33 = vrot.slane %v3024_v42, 3  ;;  %p2784_p2 = por %p2783_p1, %p2782_p0 }
  0x24   : > { %v403_v3 = vld [vmem:[%s4684_s1 + $0x228] sm:$0xff]  ;;  %v405_v4 = vld [vmem:[%s4684_s1 + $0x238] sm:$0xff]  ;;  %v406_v46 = vld [vmem:[%s4684_s1 + $0x240] sm:$0xff] }
  0x25   : > { %2205 = vmatpush1.bf16.msra.mxu0 %v2204_v37  ;;  %v387_v37 = vld [vmem:[%s4684_s1 + $0x1a8] sm:$0xff]  ;;  %v2250_v7 = vpack.c.bf16 %v405_v4, %v403_v3  ;;  %v409_v14 = vld [vmem:[%s4684_s1 + $0x258] sm:$0xff]  ;;  %p2785_p3 = pnand %p2784_p2, %p2778_p13 }
  0x26   : > { %2207 = vmatprep.subr.bf16.mxu0 %v2206_v39  ;;  %v3153_v39 = vsel %vm322_vm2, %v326_v21, %v328_v36  ;;  %v2234_v43 = vpack.c.bf16 %v389_v38, %v387_v37  ;;  %v407_v13 = vld [vmem:[%s4684_s1 + $0x248] sm:$0xff]  ;;  %v413_v21 = vld [vmem:[%s4684_s1 + $0x278] sm:$0xff] }
  0x27   : > { %v2254_v17 = vpack.c.bf16 %v409_v14, %v407_v13  ;;  %v411_v20 = vld [vmem:[%s4684_s1 + $0x268] sm:$0xff]  ;;  %v417_v38 = vld [vmem:[%s4684_s1 + $0x298] sm:$0xff]  ;;  %v434_v14 = vld [vmem:[%s4684_s1 + $0x320] sm:$0xff] }
  0x28   : > { %v2258_v23 = vpack.c.bf16 %v413_v21, %v411_v20  ;;  %v415_v37 = vld [vmem:[%s4684_s1 + $0x288] sm:$0xff]  ;;  %v421_v48 = vld [vmem:[%s4684_s1 + $0x2b8] sm:$0xff]  ;;  %v438_v20 = vld [vmem:[%s4684_s1 + $0x340] sm:$0xff] }
  0x29   : > { %2209 = vmatpush1.bf16.msra.mxu0 %v2208_v49  ;;  %v2236_v49 = vpack.c.bf16 %v388_v45, %v386_v44  ;;  %v416_v44 = vld [vmem:[%s4684_s1 + $0x290] sm:$0xff]  ;;  %v313_v45 = vsel %vm310_vm3, %v311_v32, %v312_v33  ;;  %v419_v47 = vld [vmem:[%s4684_s1 + $0x2a8] sm:$0xff]  ;;  %v433_v3 = vld [vmem:[%s4684_s1 + $0x318] sm:$0xff] }
  0x2a   : > { %2211 = vmatprep.subr.bf16.mxu0 %v2210_v51  ;;  %v390_v51 = vld [vmem:[%s4684_s1 + $0x1c0] sm:$0xff]  ;;  %v431_v2 = vld [vmem:[%s4684_s1 + $0x308] sm:$0xff]  ;;  %v440_v21 = vld [vmem:[%s4684_s1 + $0x350] sm:$0xff] }
  0x2b   : > { %v2240_v56 = vpack.c.bf16 %v392_v52, %v390_v51  ;;  %v418_v51 = vld [vmem:[%s4684_s1 + $0x2a0] sm:$0xff]  ;;  %v420_v52 = vld [vmem:[%s4684_s1 + $0x2b0] sm:$0xff] }
  0x2c   : > { %v442_v32 = vld [vmem:[%s4684_s1 + $0x360] sm:$0xff] }
  0x2d   : > { %2213 = vmatpush1.bf16.msra.mxu0 %v2212_v57  ;;  %v2242_v57 = vpack.c.bf16 %v397_v55, %v395_v53  ;;  %v423_v53 = vld [vmem:[%s4684_s1 + $0x2c8] sm:$0xff]  ;;  %v425_v55 = vld [vmem:[%s4684_s1 + $0x2d8] sm:$0xff] }
  0x2e   : > { %2215 = vmatprep.subr.bf16.mxu0 %v2214_v58  ;;  %v394_v58 = vld [vmem:[%s4684_s1 + $0x1e0] sm:$0xff] }
  0x2f   : > { %v2244_v62 = vpack.c.bf16 %v396_v59, %v394_v58  ;;  %v422_v58 = vld [vmem:[%s4684_s1 + $0x2c0] sm:$0xff]  ;;  %v424_v59 = vld [vmem:[%s4684_s1 + $0x2d0] sm:$0xff] }
  0x31   : > { %2217 = vmatpush1.bf16.msra.mxu0 %v2216_v63  ;;  %v2246_v63 = vpack.c.bf16 %v401_v61, %v399_v60  ;;  %v427_v60 = vld [vmem:[%s4684_s1 + $0x2e8] sm:$0xff]  ;;  %v429_v61 = vld [vmem:[%s4684_s1 + $0x2f8] sm:$0xff] }
  0x32   : > { %2219 = vmatprep.subr.bf16.mxu0 %v2218_v0  ;;  %v398_v0 = vld [vmem:[%s4684_s1 + $0x200] sm:$0xff] }
  0x33   : > { %v2248_v6 = vpack.c.bf16 %v400_v1, %v398_v0  ;;  %v426_v0 = vld [vmem:[%s4684_s1 + $0x2e0] sm:$0xff]  ;;  %v428_v1 = vld [vmem:[%s4684_s1 + $0x2f0] sm:$0xff] }
  0x34   : > { %v2276_v4 = vpack.c.bf16 %v428_v1, %v426_v0  ;;  %v458_v0 = vld [vmem:[%s4684_s1 + $0x3e0] sm:$0xff]  ;;  %v460_v1 = vld [vmem:[%s4684_s1 + $0x3f0] sm:$0xff] }
  0x35   : > { %2221 = vmatpush1.bf16.msra.mxu0 %v2220_v9  ;;  %v402_v9 = vld [vmem:[%s4684_s1 + $0x220] sm:$0xff] }
  0x36   : > { %2223 = vmatprep.subr.bf16.mxu0 %v2222_v10  ;;  %v404_v10 = vld [vmem:[%s4684_s1 + $0x230] sm:$0xff] }
  0x39   : > { %2225 = vmatpush1.bf16.msra.mxu0 %v2224_v16  ;;  %v2252_v16 = vpack.c.bf16 %v404_v10, %v402_v9  ;;  %v432_v9 = vld [vmem:[%s4684_s1 + $0x310] sm:$0xff]  ;;  %v435_v10 = vld [vmem:[%s4684_s1 + $0x328] sm:$0xff] }
  0x3a   : > { %2227 = vmatprep.subr.bf16.mxu0 %v2226_v18  ;;  %v408_v18 = vld [vmem:[%s4684_s1 + $0x250] sm:$0xff] }
  0x3b   : > { %v2256_v22 = vpack.c.bf16 %v408_v18, %v406_v46  ;;  %v441_v46 = vld [vmem:[%s4684_s1 + $0x358] sm:$0xff] }
  0x3d   : > { %2229 = vmatpush1.bf16.msra.mxu0 %v2228_v29  ;;  %v410_v29 = vld [vmem:[%s4684_s1 + $0x260] sm:$0xff] }
  0x3e   : > { %2231 = vmatprep.subr.bf16.mxu0 %v2230_v31  ;;  %v412_v31 = vld [vmem:[%s4684_s1 + $0x270] sm:$0xff] }
  0x41   : > { %2233 = vmatpush1.bf16.msra.mxu0 %v2232_v40  ;;  %v2260_v40 = vpack.c.bf16 %v412_v31, %v410_v29  ;;  %v2288_v29 = vpack.c.bf16 %v440_v21, %v438_v20 }
  0x42   : > { %2235 = vmatprep.subr.bf16.mxu0 %v2234_v43  ;;  %v2262_v43 = vpack.c.bf16 %v417_v38, %v415_v37  ;;  %v444_v37 = vld [vmem:[%s4684_s1 + $0x370] sm:$0xff]  ;;  %v447_v38 = vld [vmem:[%s4684_s1 + $0x388] sm:$0xff] }
  0x45   : > { %2237 = vmatpush1.bf16.msra.mxu0 %v2236_v49 }
  0x46   : > { %2239 = vmatprep.subr.bf16.mxu0 %v2238_v50  ;;  %v2266_v50 = vpack.c.bf16 %v421_v48, %v419_v47  ;;  %v451_v47 = vld [vmem:[%s4684_s1 + $0x3a8] sm:$0xff]  ;;  %v453_v48 = vld [vmem:[%s4684_s1 + $0x3b8] sm:$0xff] }
  0x49   : > { %2241 = vmatpush1.bf16.msra.mxu0 %v2240_v56  ;;  %v2268_v56 = vpack.c.bf16 %v420_v52, %v418_v51  ;;  %v450_v51 = vld [vmem:[%s4684_s1 + $0x3a0] sm:$0xff]  ;;  %v452_v52 = vld [vmem:[%s4684_s1 + $0x3b0] sm:$0xff] }
  0x4a   : > { %2243 = vmatprep.subr.bf16.mxu0 %v2242_v57  ;;  %v2270_v57 = vpack.c.bf16 %v425_v55, %v423_v53  ;;  %v455_v53 = vld [vmem:[%s4684_s1 + $0x3c8] sm:$0xff]  ;;  %v457_v55 = vld [vmem:[%s4684_s1 + $0x3d8] sm:$0xff] }
  0x4d   : > { %2245 = vmatpush1.bf16.msra.mxu0 %v2244_v62  ;;  %v2272_v62 = vpack.c.bf16 %v424_v59, %v422_v58  ;;  %v454_v58 = vld [vmem:[%s4684_s1 + $0x3c0] sm:$0xff]  ;;  %v456_v59 = vld [vmem:[%s4684_s1 + $0x3d0] sm:$0xff] }
  0x4e   : > { %2247 = vmatprep.subr.bf16.mxu0 %v2246_v63  ;;  %v2274_v63 = vpack.c.bf16 %v429_v61, %v427_v60  ;;  %v459_v60 = vld [vmem:[%s4684_s1 + $0x3e8] sm:$0xff]  ;;  %v461_v61 = vld [vmem:[%s4684_s1 + $0x3f8] sm:$0xff] }
  0x50   : > { %559 = vmatmul.mubr.f32.vlgmr.msra.gmra.mrb[0].mxu0 %v3021_v41  ;;  %v414_v41 = vld [vmem:[%s4684_s1 + $0x280] sm:$0xff] }
  0x51   : > { %2249 = vmatpush1.bf16.msra.mxu0 %v2248_v6  ;;  %564 = vmatprep.mubr.f32.mxu0 %v291_v11  ;;  %v2264_v49 = vpack.c.bf16 %v416_v44, %v414_v41  ;;  %v2278_v6 = vpack.c.bf16 %v433_v3, %v431_v2  ;;  %v437_v11 = vld [vmem:[%s4684_s1 + $0x338] sm:$0xff]  ;;  %v446_v44 = vld [vmem:[%s4684_s1 + $0x380] sm:$0xff]  ;;  %v463_v2 = vld [vmem:[%s4684_s1 + $0x408] sm:$0xff] }
  0x52   : > { %2251 = vmatprep.subr.bf16.mxu0 %v2250_v7  ;;  %v430_v7 = vld [vmem:[%s4684_s1 + $0x300] sm:$0xff]  ;;  %v2282_v13 = vpack.c.bf16 %v437_v11, %v435_v10  ;;  %v465_v3 = vld [vmem:[%s4684_s1 + $0x418] sm:$0xff]  ;;  %v467_v10 = vld [vmem:[%s4684_s1 + $0x428] sm:$0xff] }
  0x53   : > { %v469_v11 = vld [vmem:[%s4684_s1 + $0x438] sm:$0xff] }
  0x54   : > { %565 = vmatmul.mubr.f32.gmra.mrb[2].mxu0 %v3024_v42  ;;  %v470_v42 = vld [vmem:[%s4684_s1 + $0x440] sm:$0xff] }
  0x55   : > { %2253 = vmatpush1.bf16.msra.mxu0 %v2252_v16  ;;  %570 = vmatprep.mubr.f32.mxu0 %v293_v19  ;;  %v436_v16 = vld [vmem:[%s4684_s1 + $0x330] sm:$0xff] }
  0x56   : > { %2255 = vmatprep.subr.bf16.mxu0 %v2254_v17  ;;  %v439_v17 = vld [vmem:[%s4684_s1 + $0x348] sm:$0xff]  ;;  %v2284_v18 = vpack.c.bf16 %v436_v16, %v434_v14  ;;  %v466_v14 = vld [vmem:[%s4684_s1 + $0x420] sm:$0xff]  ;;  %v468_v16 = vld [vmem:[%s4684_s1 + $0x430] sm:$0xff] }
  0x57   : > { %v2286_v19 = vpack.c.bf16 %v441_v46, %v439_v17  ;;  %v315_v17 = vsel %vm310_vm3, %v312_v33, %v314_v25  ;;  %v471_v46 = vld [vmem:[%s4684_s1 + $0x448] sm:$0xff] }
  0x58   : > { %571 = vmatmul.mubr.f32.gmra.mrb[4].mxu0 %v3097_v15  ;;  %v472_v15 = vld [vmem:[%s4684_s1 + $0x450] sm:$0xff]  ;;  %v475_v25 = vld [vmem:[%s4684_s1 + $0x468] sm:$0xff] }
  0x59   : > { %2257 = vmatpush1.bf16.msra.mxu0 %v2256_v22  ;;  %576 = vmatprep.mubr.f32.mxu0 %v292_v12  ;;  %v2280_v12 = vpack.c.bf16 %v432_v9, %v430_v7  ;;  %v443_v22 = vld [vmem:[%s4684_s1 + $0x368] sm:$0xff]  ;;  %v462_v7 = vld [vmem:[%s4684_s1 + $0x400] sm:$0xff]  ;;  %v464_v9 = vld [vmem:[%s4684_s1 + $0x410] sm:$0xff]  ;;  %v2320_v33 = vpack.c.bf16 %v472_v15, %v470_v42 }
  0x5a   : > { %2259 = vmatprep.subr.bf16.mxu0 %v2258_v23  ;;  %v445_v23 = vld [vmem:[%s4684_s1 + $0x378] sm:$0xff]  ;;  %v889_v15 = vld [vmem:[%s4685_s2 + $0x20] sm:$0xff] }
  0x5b   : > { %v2290_v31 = vpack.c.bf16 %v445_v23, %v443_v22  ;;  %v474_v22 = vld [vmem:[%s4684_s1 + $0x460] sm:$0xff]  ;;  %v476_v23 = vld [vmem:[%s4684_s1 + $0x470] sm:$0xff] }
  0x5c   : > { %577 = vmatmul.mubr.f32.gmra.mrb[6].mxu0 %v3114_v24 }
  0x5d   : > { %2261 = vmatpush1.bf16.msra.mxu0 %v2260_v40  ;;  %647 = vmatprep.mubr.f32.mxu0 %v313_v45  ;;  %v449_v40 = vld [vmem:[%s4684_s1 + $0x398] sm:$0xff]  ;;  %v448_v45 = vld [vmem:[%s4684_s1 + $0x390] sm:$0xff] }
  0x5e   : > { %2263 = vmatprep.subr.bf16.mxu0 %v2262_v43  ;;  %v2292_v43 = vpack.c.bf16 %v444_v37, %v442_v32  ;;  %v2294_v41 = vpack.c.bf16 %v449_v40, %v447_v38  ;;  %v478_v32 = vld [vmem:[%s4684_s1 + $0x480] sm:$0xff]  ;;  %v480_v37 = vld [vmem:[%s4684_s1 + $0x490] sm:$0xff]  ;;  %v483_v38 = vld [vmem:[%s4684_s1 + $0x4a8] sm:$0xff] }
  0x61   : > { %2265 = vmatpush1.bf16.msra.mxu0 %v2264_v49  ;;  %v2296_v49 = vpack.c.bf16 %v448_v45, %v446_v44  ;;  %v487_v44 = vld [vmem:[%s4684_s1 + $0x4c8] sm:$0xff] }
  0x62   : > { %2267 = vmatprep.subr.bf16.mxu0 %v2266_v50  ;;  %v2298_v50 = vpack.c.bf16 %v453_v48, %v451_v47  ;;  %v486_v48 = vld [vmem:[%s4684_s1 + $0x4c0] sm:$0xff] }
  0x65   : > { %2269 = vmatpush1.bf16.msra.mxu0 %v2268_v56  ;;  %v2300_v56 = vpack.c.bf16 %v452_v52, %v450_v51  ;;  %v493_v51 = vld [vmem:[%s4684_s1 + $0x4f8] sm:$0xff] }
  0x66   : > { %2271 = vmatprep.subr.bf16.mxu0 %v2270_v57  ;;  %v2302_v57 = vpack.c.bf16 %v457_v55, %v455_v53  ;;  %v490_v55 = vld [vmem:[%s4684_s1 + $0x4e0] sm:$0xff] }
  0x69   : > { %2273 = vmatpush1.bf16.msra.mxu0 %v2272_v62  ;;  %v2304_v62 = vpack.c.bf16 %v456_v59, %v454_v58 }
  0x6a   : > { %2275 = vmatprep.subr.bf16.mxu0 %v2274_v63  ;;  %v2306_v63 = vpack.c.bf16 %v461_v61, %v459_v60 }
  0x6d   : > { %2277 = vmatpush1.bf16.msra.mxu0 %v2276_v4  ;;  %v2308_v4 = vpack.c.bf16 %v460_v1, %v458_v0 }
  0x6e   : > { %2279 = vmatprep.subr.bf16.mxu0 %v2278_v6  ;;  %v2310_v6 = vpack.c.bf16 %v465_v3, %v463_v2 }
  0x71   : > { %2281 = vmatpush1.bf16.msra.mxu0 %v2280_v12  ;;  %v2312_v12 = vpack.c.bf16 %v464_v9, %v462_v7  ;;  %v888_v7 = vld [vmem:[%s4685_s2 + $0x18] sm:$0xff] }
  0x72   : > { %2283 = vmatprep.subr.bf16.mxu0 %v2282_v13  ;;  %v2314_v13 = vpack.c.bf16 %v469_v11, %v467_v10 }
  0x75   : > { %2285 = vmatpush1.bf16.msra.mxu0 %v2284_v18  ;;  %v473_v18 = vld [vmem:[%s4684_s1 + $0x458] sm:$0xff] }
  0x76   : > { %2287 = vmatprep.subr.bf16.mxu0 %v2286_v19  ;;  %v2316_v19 = vpack.c.bf16 %v468_v16, %v466_v14  ;;  %v2318_v20 = vpack.c.bf16 %v473_v18, %v471_v46  ;;  %v885_v16 = vld [vmem:[%s4685_s2] sm:$0xff]  ;;  %v890_v46 = vld [vmem:[%s4685_s2 + $0x28] sm:$0xff]  ;;  %v892_v18 = vld [vmem:[%s4685_s2 + $0x38] sm:$0xff] }
  0x77   : > { %v2356_v42 = vpack.c.bf16 %v892_v18, %v890_v46  ;;  %v932_v46 = vld [vmem:[%s4685_s2 + $0x178] sm:$0xff] }
  0x79   : > { %2289 = vmatpush1.bf16.msra.mxu0 %v2288_v29  ;;  %v479_v29 = vld [vmem:[%s4684_s1 + $0x488] sm:$0xff] }
  0x7a   : > { %2291 = vmatprep.subr.bf16.mxu0 %v2290_v31 }
  0x7d   : > { %2293 = vmatpush1.bf16.msra.mxu0 %v2292_v43  ;;  %v482_v43 = vld [vmem:[%s4684_s1 + $0x4a0] sm:$0xff] }
  0x7e   : > { %2295 = vmatprep.subr.bf16.mxu0 %v2294_v41  ;;  %v484_v41 = vld [vmem:[%s4684_s1 + $0x4b0] sm:$0xff] }
  0x7f   : > { %v2332_v45 = vpack.c.bf16 %v484_v41, %v482_v43  ;;  %v901_v41 = vld [vmem:[%s4685_s2 + $0x80] sm:$0xff] }
  0x81   : > { %2297 = vmatpush1.bf16.msra.mxu0 %v2296_v49  ;;  %v488_v49 = vld [vmem:[%s4684_s1 + $0x4d0] sm:$0xff] }
  0x82   : > { %2299 = vmatprep.subr.bf16.mxu0 %v2298_v50  ;;  %v491_v50 = vld [vmem:[%s4684_s1 + $0x4e8] sm:$0xff]  ;;  %v2336_v52 = vpack.c.bf16 %v488_v49, %v486_v48  ;;  %v905_v49 = vld [vmem:[%s4685_s2 + $0xa0] sm:$0xff] }
  0x83   : > { %v2338_v53 = vpack.c.bf16 %v493_v51, %v491_v50  ;;  %v907_v50 = vld [vmem:[%s4685_s2 + $0xb0] sm:$0xff]  ;;  %v910_v51 = vld [vmem:[%s4685_s2 + $0xc8] sm:$0xff] }
  0x85   : > { %2301 = vmatpush1.bf16.msra.mxu0 %v2300_v56  ;;  %v492_v56 = vld [vmem:[%s4684_s1 + $0x4f0] sm:$0xff] }
  0x86   : > { %2303 = vmatprep.subr.bf16.mxu0 %v2302_v57  ;;  %v2340_v57 = vpack.c.bf16 %v492_v56, %v490_v55  ;;  %v909_v56 = vld [vmem:[%s4685_s2 + $0xc0] sm:$0xff] }
  0x89   : > { %2305 = vmatpush1.bf16.msra.mxu0 %v2304_v62 }
  0x8a   : > { %2307 = vmatprep.subr.bf16.mxu0 %v2306_v63 }
  0x8d   : > { %2309 = vmatpush1.bf16.msra.mxu0 %v2308_v4 }
  0x8e   : > { %2311 = vmatprep.subr.bf16.mxu0 %v2310_v6  ;;  %v886_v6 = vld [vmem:[%s4685_s2 + $0x8] sm:$0xff] }
  0x8f   : > { %v2352_v14 = vpack.c.bf16 %v888_v7, %v886_v6  ;;  %v921_v6 = vld [vmem:[%s4685_s2 + $0x120] sm:$0xff]  ;;  %v923_v7 = vld [vmem:[%s4685_s2 + $0x130] sm:$0xff] }
  0x90   : > { %648 = vmatmul.mubr.f32.vlgmr.msra.gmra.mrb[0].mxu0 %v3046_v54  ;;  %v477_v54 = vld [vmem:[%s4684_s1 + $0x478] sm:$0xff] }
  0x91   : > { %2313 = vmatpush1.bf16.msra.mxu0 %v2312_v12  ;;  %653 = vmatprep.mubr.f32.mxu0 %v315_v17  ;;  %v2322_v21 = vpack.c.bf16 %v477_v54, %v475_v25  ;;  %v887_v17 = vld [vmem:[%s4685_s2 + $0x10] sm:$0xff]  ;;  %v894_v54 = vld [vmem:[%s4685_s2 + $0x48] sm:$0xff]  ;;  %v1424_v12 = vld [vmem:[%s4686_s3 + $0xa0] sm:$0xff] }
  0x92   : > { %2315 = vmatprep.subr.bf16.mxu0 %v2314_v13  ;;  %v891_v25 = vld [vmem:[%s4685_s2 + $0x30] sm:$0xff] }
  0x94   : > { %654 = vmatmul.mubr.f32.gmra.mrb[2].mxu0 %v3118_v26  ;;  %v481_v26 = vld [vmem:[%s4684_s1 + $0x498] sm:$0xff] }
  0x95   : > { %2317 = vmatpush1.bf16.msra.mxu0 %v2316_v19  ;;  %659 = vmatprep.mubr.f32.mxu0 %v3136_v34  ;;  %v2324_v34 = vpack.c.bf16 %v476_v23, %v474_v22  ;;  %v2326_v31 = vpack.c.bf16 %v481_v26, %v479_v29  ;;  %v769_v19 = vld [vmem:[%s4688_s5] sm:$0xff]  ;;  %v2358_v22 = vpack.c.bf16 %v891_v25, %v889_v15  ;;  %v895_v26 = vld [vmem:[%s4685_s2 + $0x50] sm:$0xff]  ;;  %v934_v15 = vld [vmem:[%s4685_s2 + $0x188] sm:$0xff] }
  0x96   : > { %2319 = vmatprep.subr.bf16.mxu0 %v2318_v20  ;;  %v2354_v20 = vpack.c.bf16 %v887_v17, %v885_v16  ;;  %v893_v29 = vld [vmem:[%s4685_s2 + $0x40] sm:$0xff]  ;;  %v927_v16 = vld [vmem:[%s4685_s2 + $0x150] sm:$0xff]  ;;  %v930_v17 = vld [vmem:[%s4685_s2 + $0x168] sm:$0xff] }
  0x97   : > { %v936_v25 = vld [vmem:[%s4685_s2 + $0x198] sm:$0xff] }
  0x98   : > { %660 = vmatmul.mubr.f32.gmra.mrb[4].mxu0 %v3141_v35  ;;  %v485_v35 = vld [vmem:[%s4684_s1 + $0x4b8] sm:$0xff] }
  0x99   : > { %2321 = vmatpush1.bf16.msra.mxu0 %v2320_v33  ;;  %665 = vmatprep.mubr.f32.mxu0 %v316_v27  ;;  %v2328_v27 = vpack.c.bf16 %v480_v37, %v478_v32  ;;  %v2330_v40 = vpack.c.bf16 %v485_v35, %v483_v38  ;;  %v896_v33 = vld [vmem:[%s4685_s2 + $0x58] sm:$0xff]  ;;  %v897_v37 = vld [vmem:[%s4685_s2 + $0x60] sm:$0xff]  ;;  %v899_v38 = vld [vmem:[%s4685_s2 + $0x70] sm:$0xff] }
  0x9a   : > { %2323 = vmatprep.subr.bf16.mxu0 %v2322_v21  ;;  %v770_v21 = vld [vmem:[%s4688_s5 + $0x8] sm:$0x3f]  ;;  %v2360_v23 = vpack.c.bf16 %v896_v33, %v894_v54  ;;  %v2400_v33 = vpack.c.bf16 %v936_v25, %v934_v15  ;;  %v963_v15 = vld [vmem:[%s4685_s2 + $0x270] sm:$0xff] }
  0x9b   : > { %v902_v35 = vld [vmem:[%s4685_s2 + $0x88] sm:$0xff] }
  0x9c   : > { %666 = vmatmul.mubr.f32.gmra.mrb[6].mxu0 %v304_v28  ;;  %v489_v28 = vld [vmem:[%s4684_s1 + $0x4d8] sm:$0xff]  ;;  %v966_v25 = vld [vmem:[%s4685_s2 + $0x288] sm:$0xff] }
  0x9d   : > { %2325 = vmatpush1.bf16.msra.mxu0 %v2324_v34  ;;  %736 = vmatprep.mubr.f32.mxu0 %v2839_v5  ;;  %v2334_v47 = vpack.c.bf16 %v489_v28, %v487_v44  ;;  %v900_v34 = vld [vmem:[%s4685_s2 + $0x78] sm:$0xff]  ;;  %v903_v44 = vld [vmem:[%s4685_s2 + $0x90] sm:$0xff]  ;;  %v906_v28 = vld [vmem:[%s4685_s2 + $0xa8] sm:$0xff] }
  0x9e   : > { %2327 = vmatprep.subr.bf16.mxu0 %v2326_v31  ;;  %v2362_v31 = vpack.c.bf16 %v895_v26, %v893_v29  ;;  %v940_v29 = vld [vmem:[%s4685_s2 + $0x1b8] sm:$0xff] }
  0xa1   : > { %2329 = vmatpush1.bf16.msra.mxu0 %v2328_v27  ;;  %v904_v27 = vld [vmem:[%s4685_s2 + $0x98] sm:$0xff] }
  0xa2   : > { %2331 = vmatprep.subr.bf16.mxu0 %v2330_v40  ;;  %v2366_v40 = vpack.c.bf16 %v899_v38, %v897_v37  ;;  %v2368_v43 = vpack.c.bf16 %v904_v27, %v902_v35  ;;  %v944_v37 = vld [vmem:[%s4685_s2 + $0x1d8] sm:$0xff]  ;;  %v941_v27 = vld [vmem:[%s4685_s2 + $0x1c0] sm:$0xff] }
  0xa5   : > { %2333 = vmatpush1.bf16.msra.mxu0 %v2332_v45  ;;  %v908_v45 = vld [vmem:[%s4685_s2 + $0xb8] sm:$0xff] }
  0xa6   : > { %2335 = vmatprep.subr.bf16.mxu0 %v2334_v47  ;;  %v2370_v47 = vpack.c.bf16 %v903_v44, %v901_v41  ;;  %v2372_v48 = vpack.c.bf16 %v908_v45, %v906_v28  ;;  %v948_v41 = vld [vmem:[%s4685_s2 + $0x1f8] sm:$0xff]  ;;  %v945_v45 = vld [vmem:[%s4685_s2 + $0x1e0] sm:$0xff] }
  0xa9   : > { %2337 = vmatpush1.bf16.msra.mxu0 %v2336_v52  ;;  %v912_v52 = vld [vmem:[%s4685_s2 + $0xd8] sm:$0xff] }
  0xaa   : > { %2339 = vmatprep.subr.bf16.mxu0 %v2338_v53  ;;  %v2374_v53 = vpack.c.bf16 %v907_v50, %v905_v49  ;;  %v2376_v55 = vpack.c.bf16 %v912_v52, %v910_v51  ;;  %v950_v49 = vld [vmem:[%s4685_s2 + $0x208] sm:$0xff]  ;;  %v952_v50 = vld [vmem:[%s4685_s2 + $0x218] sm:$0xff]  ;;  %v949_v52 = vld [vmem:[%s4685_s2 + $0x200] sm:$0xff] }
  0xab   : > { %v2416_v51 = vpack.c.bf16 %v952_v50, %v950_v49  ;;  %v982_v49 = vld [vmem:[%s4685_s2 + $0x308] sm:$0xff]  ;;  %v984_v50 = vld [vmem:[%s4685_s2 + $0x318] sm:$0xff] }
  0xad   : > { %2341 = vmatpush1.bf16.msra.mxu0 %v2340_v57  ;;  %v911_v57 = vld [vmem:[%s4685_s2 + $0xd0] sm:$0xff] }
  0xb0   : > { %737 = vmatmul.mubr.f32.vlgmr.msra.gmra.mrb[0].mxu0 %v3082_v8 }
  0xb1   : > { %742 = vmatprep.mubr.f32.mxu0 %v2839_v5 }
  0xb4   : > { %743 = vmatmul.mubr.f32.gmra.mrb[2].mxu0 %v3123_v30 }
  0xb5   : > { %748 = vmatprep.mubr.f32.mxu0 %v2839_v5 }
  0xb8   : > { %749 = vmatmul.mubr.f32.gmra.mrb[4].mxu0 %v3153_v39 }
  0xb9   : > { %754 = vmatprep.mubr.f32.mxu0 %v2839_v5 }
  0xbc   : > { %755 = vmatmul.mubr.f32.gmra.mrb[6].mxu0 %v328_v36 }
  0xbd   : > { %1387 = vmatprep.mubr.f32.mxu0 %v2839_v5 }
 0x183   : > { %v738_v58 = vpop.f32.mrb[0].mxu0 }
 0x184   : > { %v740_v59 = vpop.f32.mrb[1].mxu0  ;;  %v761_v61 = vmax.f32 %v738_v58, 0.0  ;;  %v914_v58 = vld [vmem:[%s4685_s2 + $0xe8] sm:$0xff] }
 0x185   : > { %v762_v63 = vmax.f32 %v740_v59, 0.0  ;;  %v916_v59 = vld [vmem:[%s4685_s2 + $0xf8] sm:$0xff] }
 0x187   : > { %v744_v60 = vpop.f32.mrb[2].mxu0 }
 0x188   : > { %v763_v8 = vmax.f32 %v744_v60, 0.0  ;;  %v746_v62 = vpop.f32.mrb[3].mxu0  ;;  %v2378_v60 = vpack.c.bf16 %v911_v57, %v909_v56  ;;  %v956_v56 = vld [vmem:[%s4685_s2 + $0x238] sm:$0xff] }
 0x189   : > { %v764_v0 = vmax.f32 %v746_v62, 0.0  ;;  %v915_v62 = vld [vmem:[%s4685_s2 + $0xf0] sm:$0xff] }
 0x18a   : > { %v2344_v30 = vpack.c.bf16 %v763_v8, %v761_v61  ;;  %v2380_v61 = vpack.c.bf16 %v916_v59, %v914_v58  ;;  %v913_v8 = vld [vmem:[%s4685_s2 + $0xe0] sm:$0xff] }
 0x18b   : > { %v750_v1 = vpop.f32.mrb[4].mxu0  ;;  %v2342_v2 = vpack.c.bf16 %v764_v0, %v762_v63  ;;  %v918_v63 = vld [vmem:[%s4685_s2 + $0x108] sm:$0xff]  ;;  %v920_v0 = vld [vmem:[%s4685_s2 + $0x118] sm:$0xff]  ;;  %v953_v59 = vld [vmem:[%s4685_s2 + $0x220] sm:$0xff] }
 0x18c   : > { %v752_v3 = vpop.f32.mrb[5].mxu0  ;;  %v765_v4 = vmax.f32 %v750_v1, 0.0  ;;  %v2384_v1 = vpack.c.bf16 %v920_v0, %v918_v63  ;;  %v960_v63 = vld [vmem:[%s4685_s2 + $0x258] sm:$0xff] }
 0x18d   : > { %2343 = vmatprep.subr.bf16.mxu1 %v2342_v2  ;;  %v766_v9 = vmax.f32 %v752_v3, 0.0  ;;  %v917_v2 = vld [vmem:[%s4685_s2 + $0x100] sm:$0xff]  ;;  %v919_v3 = vld [vmem:[%s4685_s2 + $0x110] sm:$0xff] }
 0x18e   : > { %2345 = vmatpush1.bf16.msra.mxu1 %v2344_v30  ;;  %v2382_v30 = vpack.c.bf16 %v915_v62, %v913_v8  ;;  %v955_v8 = vld [vmem:[%s4685_s2 + $0x230] sm:$0xff]  ;;  %v958_v62 = vld [vmem:[%s4685_s2 + $0x248] sm:$0xff] }
 0x18f   : > { %v756_v39 = vpop.f32.mrb[6].mxu0 }
 0x190   : > { %v767_v24 = vmax.f32 %v756_v39, 0.0  ;;  %v758_v36 = vpop.f32.mrb[7].mxu0  ;;  %v922_v39 = vld [vmem:[%s4685_s2 + $0x128] sm:$0xff] }
 0x191   : > { %v768_v10 = vmax.f32 %v758_v36, 0.0 }
 0x192   : > { %v2349_v11 = vpack.c.bf16 %v767_v24, %v765_v4  ;;  %v924_v4 = vld [vmem:[%s4685_s2 + $0x138] sm:$0xff]  ;;  %v2386_v24 = vpack.c.bf16 %v919_v3, %v917_v2  ;;  %v957_v2 = vld [vmem:[%s4685_s2 + $0x240] sm:$0xff] }
 0x193   : > { %v2346_v13 = vpack.c.bf16 %v768_v10, %v766_v9  ;;  %v2388_v36 = vpack.c.bf16 %v924_v4, %v922_v39  ;;  %v926_v9 = vld [vmem:[%s4685_s2 + $0x148] sm:$0xff]  ;;  %v928_v10 = vld [vmem:[%s4685_s2 + $0x158] sm:$0xff] }
 0x195   : > { %2348 = vmatprep.subr.msk.bf16.mxu1 %vm3518_vm5, %v2346_v13  ;;  %v2392_v13 = vpack.c.bf16 %v928_v10, %v926_v9 }
 0x196   : > { %2351 = vmatpush1.bf16.msk.msra.mxu1 %vm3518_vm5, %v2349_v11  ;;  %v2390_v11 = vpack.c.bf16 %v923_v7, %v921_v6  ;;  %v959_v6 = vld [vmem:[%s4685_s2 + $0x250] sm:$0xff] }
 0x197   : > { %2353 = vmatprep.subr.bf16.mxu1 %v2352_v14  ;;  %v925_v14 = vld [vmem:[%s4685_s2 + $0x140] sm:$0xff] }
 0x198   : > { %v2394_v18 = vpack.c.bf16 %v927_v16, %v925_v14  ;;  %v964_v14 = vld [vmem:[%s4685_s2 + $0x278] sm:$0xff] }
 0x199   : > { %1999 = vmatmul.mubr.msk.f32.vlgmr.msra.gmra.mrb[0].mxu1 %vm771_vm6, %v769_v19  ;;  %v2396_v19 = vpack.c.bf16 %v932_v46, %v930_v17 }
 0x19a   : > { %854 = vmatprep.mubr.f32.mxu1 %v2839_v5  ;;  %2355 = vmatpush1.bf16.msra.mxu1 %v2354_v20  ;;  %v898_v5 = vld [vmem:[%s4685_s2 + $0x68] sm:$0xff]  ;;  %v929_v20 = vld [vmem:[%s4685_s2 + $0x160] sm:$0xff] }
 0x19b   : > { %2357 = vmatprep.subr.bf16.mxu1 %v2356_v42  ;;  %v2364_v32 = vpack.c.bf16 %v900_v34, %v898_v5  ;;  %v931_v42 = vld [vmem:[%s4685_s2 + $0x170] sm:$0xff]  ;;  %v937_v34 = vld [vmem:[%s4685_s2 + $0x1a0] sm:$0xff] }
 0x19c   : > { %v2398_v54 = vpack.c.bf16 %v931_v42, %v929_v20  ;;  %v961_v42 = vld [vmem:[%s4685_s2 + $0x260] sm:$0xff] }
 0x19d   : > { %2000 = vmatmul.mubr.msk.f32.gmra.mrb[2].mxu1 %vm771_vm6, %v770_v21  ;;  %v933_v21 = vld [vmem:[%s4685_s2 + $0x180] sm:$0xff] }
 0x19e   : > { %2359 = vmatpush1.bf16.msra.mxu1 %v2358_v22  ;;  %v935_v22 = vld [vmem:[%s4685_s2 + $0x190] sm:$0xff] }
 0x19f   : > { %2361 = vmatprep.subr.bf16.mxu1 %v2360_v23  ;;  %v938_v23 = vld [vmem:[%s4685_s2 + $0x1a8] sm:$0xff]  ;;  %v2402_v26 = vpack.c.bf16 %v935_v22, %v933_v21  ;;  %v965_v22 = vld [vmem:[%s4685_s2 + $0x280] sm:$0xff] }
 0x1a0   : > { %v2404_v5 = vpack.c.bf16 %v940_v29, %v938_v23  ;;  %v967_v23 = vld [vmem:[%s4685_s2 + $0x290] sm:$0xff]  ;;  %v970_v29 = vld [vmem:[%s4685_s2 + $0x2a8] sm:$0xff] }
 0x1a2   : > { %2363 = vmatpush1.bf16.msra.mxu1 %v2362_v31  ;;  %v939_v31 = vld [vmem:[%s4685_s2 + $0x1b0] sm:$0xff] }
 0x1a3   : > { %2365 = vmatprep.subr.bf16.mxu1 %v2364_v32  ;;  %v942_v32 = vld [vmem:[%s4685_s2 + $0x1c8] sm:$0xff]  ;;  %v2406_v38 = vpack.c.bf16 %v939_v31, %v937_v34  ;;  %v969_v31 = vld [vmem:[%s4685_s2 + $0x2a0] sm:$0xff] }
 0x1a4   : > { %v2408_v35 = vpack.c.bf16 %v944_v37, %v942_v32  ;;  %v971_v32 = vld [vmem:[%s4685_s2 + $0x2b0] sm:$0xff]  ;;  %v974_v37 = vld [vmem:[%s4685_s2 + $0x2c8] sm:$0xff] }
 0x1a6   : > { %2367 = vmatpush1.bf16.msra.mxu1 %v2366_v40  ;;  %v943_v40 = vld [vmem:[%s4685_s2 + $0x1d0] sm:$0xff] }
 0x1a7   : > { %2369 = vmatprep.subr.bf16.mxu1 %v2368_v43  ;;  %v946_v43 = vld [vmem:[%s4685_s2 + $0x1e8] sm:$0xff]  ;;  %v2410_v44 = vpack.c.bf16 %v943_v40, %v941_v27  ;;  %v973_v40 = vld [vmem:[%s4685_s2 + $0x2c0] sm:$0xff] }
 0x1a8   : > { %v2412_v28 = vpack.c.bf16 %v948_v41, %v946_v43  ;;  %v975_v43 = vld [vmem:[%s4685_s2 + $0x2d0] sm:$0xff]  ;;  %v978_v41 = vld [vmem:[%s4685_s2 + $0x2e8] sm:$0xff] }
 0x1aa   : > { %2371 = vmatpush1.bf16.msra.mxu1 %v2370_v47  ;;  %v947_v47 = vld [vmem:[%s4685_s2 + $0x1f0] sm:$0xff] }
 0x1ab   : > { %2373 = vmatprep.subr.bf16.mxu1 %v2372_v48  ;;  %v2414_v48 = vpack.c.bf16 %v947_v47, %v945_v45  ;;  %v977_v47 = vld [vmem:[%s4685_s2 + $0x2e0] sm:$0xff] }
 0x1ae   : > { %2375 = vmatpush1.bf16.msra.mxu1 %v2374_v53  ;;  %v951_v53 = vld [vmem:[%s4685_s2 + $0x210] sm:$0xff] }
 0x1af   : > { %2377 = vmatprep.subr.bf16.mxu1 %v2376_v55  ;;  %v954_v55 = vld [vmem:[%s4685_s2 + $0x228] sm:$0xff]  ;;  %v2418_v58 = vpack.c.bf16 %v951_v53, %v949_v52  ;;  %v2448_v52 = vpack.c.bf16 %v984_v50, %v982_v49  ;;  %v981_v53 = vld [vmem:[%s4685_s2 + $0x300] sm:$0xff]  ;;  %v1020_v50 = vld [vmem:[%s4685_s2 + $0x438] sm:$0xff] }
 0x1b0   : > { %v1018_v49 = vld [vmem:[%s4685_s2 + $0x428] sm:$0xff] }
 0x1b2   : > { %2379 = vmatpush1.bf16.msra.mxu1 %v2378_v60 }
 0x1b3   : > { %2381 = vmatprep.subr.bf16.mxu1 %v2380_v61  ;;  %v2420_v61 = vpack.c.bf16 %v956_v56, %v954_v55  ;;  %v983_v55 = vld [vmem:[%s4685_s2 + $0x310] sm:$0xff]  ;;  %v986_v56 = vld [vmem:[%s4685_s2 + $0x328] sm:$0xff] }
 0x1b6   : > { %2383 = vmatpush1.bf16.msra.mxu1 %v2382_v30  ;;  %v2422_v30 = vpack.c.bf16 %v955_v8, %v953_v59  ;;  %v990_v8 = vld [vmem:[%s4685_s2 + $0x348] sm:$0xff] }
 0x1b7   : > { %2385 = vmatprep.subr.bf16.mxu1 %v2384_v1  ;;  %v2424_v1 = vpack.c.bf16 %v960_v63, %v958_v62  ;;  %v992_v62 = vld [vmem:[%s4685_s2 + $0x358] sm:$0xff] }
 0x1ba   : > { %2387 = vmatpush1.bf16.msra.mxu1 %v2386_v24 }
 0x1bb   : > { %2389 = vmatprep.subr.bf16.mxu1 %v2388_v36 }
 0x1be   : > { %2391 = vmatpush1.bf16.msra.mxu1 %v2390_v11 }
 0x1bf   : > { %2393 = vmatprep.subr.bf16.mxu1 %v2392_v13  ;;  %v962_v13 = vld [vmem:[%s4685_s2 + $0x268] sm:$0xff] }
 0x1c0   : > { %v2428_v20 = vpack.c.bf16 %v964_v14, %v962_v13  ;;  %v995_v13 = vld [vmem:[%s4685_s2 + $0x370] sm:$0xff]  ;;  %v998_v14 = vld [vmem:[%s4685_s2 + $0x388] sm:$0xff] }
 0x1c2   : > { %2395 = vmatpush1.bf16.msra.mxu1 %v2394_v18  ;;  %v2426_v18 = vpack.c.bf16 %v959_v6, %v957_v2  ;;  %v991_v2 = vld [vmem:[%s4685_s2 + $0x350] sm:$0xff] }
 0x1c3   : > { %2397 = vmatprep.subr.bf16.mxu1 %v2396_v19 }
 0x1c6   : > { %2399 = vmatpush1.bf16.msra.mxu1 %v2398_v54  ;;  %v968_v54 = vld [vmem:[%s4685_s2 + $0x298] sm:$0xff] }
 0x1c7   : > { %2401 = vmatprep.subr.bf16.mxu1 %v2400_v33  ;;  %v2430_v33 = vpack.c.bf16 %v963_v15, %v961_v42  ;;  %v2432_v21 = vpack.c.bf16 %v968_v54, %v966_v25  ;;  %v997_v42 = vld [vmem:[%s4685_s2 + $0x380] sm:$0xff]  ;;  %v999_v15 = vld [vmem:[%s4685_s2 + $0x390] sm:$0xff]  ;;  %v1002_v25 = vld [vmem:[%s4685_s2 + $0x3a8] sm:$0xff] }
 0x1c8   : > { %v1004_v54 = vld [vmem:[%s4685_s2 + $0x3b8] sm:$0xff] }
 0x1ca   : > { %2403 = vmatpush1.bf16.msra.mxu1 %v2402_v26  ;;  %v972_v26 = vld [vmem:[%s4685_s2 + $0x2b8] sm:$0xff] }
 0x1cb   : > { %2405 = vmatprep.subr.bf16.mxu1 %v2404_v5  ;;  %v2434_v5 = vpack.c.bf16 %v967_v23, %v965_v22  ;;  %v2436_v34 = vpack.c.bf16 %v972_v26, %v970_v29  ;;  %v1001_v22 = vld [vmem:[%s4685_s2 + $0x3a0] sm:$0xff]  ;;  %v1003_v23 = vld [vmem:[%s4685_s2 + $0x3b0] sm:$0xff]  ;;  %v1006_v29 = vld [vmem:[%s4685_s2 + $0x3c8] sm:$0xff] }
 0x1cc   : > { %v1008_v26 = vld [vmem:[%s4685_s2 + $0x3d8] sm:$0xff] }
 0x1ce   : > { %2407 = vmatpush1.bf16.msra.mxu1 %v2406_v38  ;;  %v976_v38 = vld [vmem:[%s4685_s2 + $0x2d8] sm:$0xff] }
 0x1cf   : > { %2409 = vmatprep.subr.bf16.mxu1 %v2408_v35  ;;  %v2438_v35 = vpack.c.bf16 %v971_v32, %v969_v31  ;;  %v2440_v27 = vpack.c.bf16 %v976_v38, %v974_v37  ;;  %v1005_v31 = vld [vmem:[%s4685_s2 + $0x3c0] sm:$0xff]  ;;  %v1007_v32 = vld [vmem:[%s4685_s2 + $0x3d0] sm:$0xff]  ;;  %v1010_v37 = vld [vmem:[%s4685_s2 + $0x3e8] sm:$0xff] }
 0x1d0   : > { %v1012_v38 = vld [vmem:[%s4685_s2 + $0x3f8] sm:$0xff] }
 0x1d2   : > { %2411 = vmatpush1.bf16.msra.mxu1 %v2410_v44  ;;  %v980_v44 = vld [vmem:[%s4685_s2 + $0x2f8] sm:$0xff] }
 0x1d3   : > { %2413 = vmatprep.subr.bf16.mxu1 %v2412_v28  ;;  %v2442_v28 = vpack.c.bf16 %v975_v43, %v973_v40  ;;  %v2444_v45 = vpack.c.bf16 %v980_v44, %v978_v41  ;;  %v1009_v40 = vld [vmem:[%s4685_s2 + $0x3e0] sm:$0xff]  ;;  %v1011_v43 = vld [vmem:[%s4685_s2 + $0x3f0] sm:$0xff]  ;;  %v1014_v41 = vld [vmem:[%s4685_s2 + $0x408] sm:$0xff] }
 0x1d4   : > { %v1016_v44 = vld [vmem:[%s4685_s2 + $0x418] sm:$0xff] }
 0x1d6   : > { %2415 = vmatpush1.bf16.msra.mxu1 %v2414_v48  ;;  %v979_v48 = vld [vmem:[%s4685_s2 + $0x2f0] sm:$0xff] }
 0x1d7   : > { %2417 = vmatprep.subr.bf16.mxu1 %v2416_v51  ;;  %v2446_v51 = vpack.c.bf16 %v979_v48, %v977_v47  ;;  %v1013_v47 = vld [vmem:[%s4685_s2 + $0x400] sm:$0xff]  ;;  %v1015_v48 = vld [vmem:[%s4685_s2 + $0x410] sm:$0xff] }
 0x26c   : > { %v850_v57 = vpop.f32.mrb[0].mxu1 }
 0x26d   : > { %v852_v60 = vpop.f32.mrb[1].mxu1  ;;  %v865_v3 = vrot.slane %v850_v57, 1  ;;  %v875_v39 = vrot.slane %v850_v57, 2 }
 0x26e   : > { %1141 = vmatprep.mubr.f32.mxu1 %v852_v60  ;;  %v868_v7 = vrot.slane %v852_v60, 1  ;;  %v878_v9 = vrot.slane %v852_v60, 2  ;;  %v985_v60 = vld [vmem:[%s4685_s2 + $0x320] sm:$0xff] }
 0x26f   : > { %1142 = vmatmul.mubr.f32.vlgmr.msra.gmra.mrb[4].mxu1 %v850_v57  ;;  %v988_v57 = vld [vmem:[%s4685_s2 + $0x338] sm:$0xff] }
 0x270   : > { %2419 = vmatpush1.bf16.msra.mxu1 %v2418_v58  ;;  %v3751_v0 = vpop.f32.mrb[2].mxu1  ;;  %v2450_v58 = vpack.c.bf16 %v983_v55, %v981_v53  ;;  %v2452_v59 = vpack.c.bf16 %v988_v57, %v986_v56  ;;  %v1017_v53 = vld [vmem:[%s4685_s2 + $0x420] sm:$0xff]  ;;  %v1019_v55 = vld [vmem:[%s4685_s2 + $0x430] sm:$0xff]  ;;  %v1022_v56 = vld [vmem:[%s4685_s2 + $0x448] sm:$0xff] }
 0x271   : > { %v866_v4 = vrot.slane %v3751_v0, 1  ;;  %v876_v24 = vrot.slane %v3751_v0, 2  ;;  %v3758_v36 = vpop.f32.mrb[3].mxu1  ;;  %2421 = vmatprep.subr.bf16.mxu1 %v2420_v61  ;;  %v987_v61 = vld [vmem:[%s4685_s2 + $0x330] sm:$0xff]  ;;  %v1024_v57 = vld [vmem:[%s4685_s2 + $0x458] sm:$0xff] }
 0x272   : > { %v869_v10 = vrot.slane %v3758_v36, 1  ;;  %v879_v11 = vrot.slane %v3758_v36, 2  ;;  %1147 = vmatprep.mubr.f32.mxu1 %v3758_v36  ;;  %v2454_v63 = vpack.c.bf16 %v987_v61, %v985_v60  ;;  %v1021_v60 = vld [vmem:[%s4685_s2 + $0x440] sm:$0xff]  ;;  %v1023_v61 = vld [vmem:[%s4685_s2 + $0x450] sm:$0xff]  ;;  %v1437_v36 = vld [vmem:[%s4686_s3 + $0x108] sm:$0xff] }
 0x273   : > { %1148 = vmatmul.mubr.f32.gmra.mrb[6].mxu1 %v3751_v0  ;;  %v3776_v16 = vsel %vm286_vm0, %v865_v3, %v866_v4  ;;  %v3781_v17 = vsel %vm298_vm1, %v875_v39, %v876_v24  ;;  %v994_v3 = vld [vmem:[%s4685_s2 + $0x368] sm:$0xff]  ;;  %v996_v39 = vld [vmem:[%s4685_s2 + $0x378] sm:$0xff]  ;;  %v1454_v0 = vld [vmem:[%s4686_s3 + $0x190] sm:$0xff] }
 0x274   : > { %2423 = vmatpush1.bf16.msra.mxu1 %v2422_v30  ;;  %v870_v46 = vsel %vm286_vm0, %v868_v7, %v869_v10  ;;  %v3789_v19 = vsel %vm298_vm1, %v878_v9, %v879_v11  ;;  %v2456_v30 = vpack.c.bf16 %v992_v62, %v990_v8  ;;  %v2460_v7 = vpack.c.bf16 %v996_v39, %v994_v3  ;;  %v993_v9 = vld [vmem:[%s4685_s2 + $0x360] sm:$0xff]  ;;  %v1026_v8 = vld [vmem:[%s4685_s2 + $0x468] sm:$0xff]  ;;  %v1031_v39 = vld [vmem:[%s4685_s2 + $0x490] sm:$0xff] }
 0x275   : > { %1218 = vmatprep.mubr.f32.mxu1 %v870_v46  ;;  %2425 = vmatprep.subr.bf16.mxu1 %v2424_v1  ;;  %v989_v1 = vld [vmem:[%s4685_s2 + $0x340] sm:$0xff]  ;;  %v1000_v46 = vld [vmem:[%s4685_s2 + $0x398] sm:$0xff] }
 0x276   : > { %v2458_v6 = vpack.c.bf16 %v991_v2, %v989_v1  ;;  %v1030_v1 = vld [vmem:[%s4685_s2 + $0x488] sm:$0xff]  ;;  %v1029_v3 = vld [vmem:[%s4685_s2 + $0x480] sm:$0xff] }
 0x278   : > { %2427 = vmatpush1.bf16.msra.mxu1 %v2426_v18  ;;  %v2462_v18 = vpack.c.bf16 %v995_v13, %v993_v9  ;;  %v2498_v9 = vpack.c.bf16 %v1031_v39, %v1029_v3 }
 0x279   : > { %2429 = vmatprep.subr.bf16.mxu1 %v2428_v20  ;;  %v2464_v20 = vpack.c.bf16 %v1000_v46, %v998_v14  ;;  %v1033_v14 = vld [vmem:[%s4685_s2 + $0x4a0] sm:$0xff]  ;;  %v1035_v46 = vld [vmem:[%s4685_s2 + $0x4b0] sm:$0xff] }
 0x27c   : > { %2431 = vmatpush1.bf16.msra.mxu1 %v2430_v33  ;;  %v2466_v33 = vpack.c.bf16 %v999_v15, %v997_v42  ;;  %v2502_v42 = vpack.c.bf16 %v1035_v46, %v1033_v14 }
 0x27d   : > { %2433 = vmatprep.subr.bf16.mxu1 %v2432_v21  ;;  %v2468_v21 = vpack.c.bf16 %v1004_v54, %v1002_v25  ;;  %v1037_v25 = vld [vmem:[%s4685_s2 + $0x4c0] sm:$0xff]  ;;  %v1039_v54 = vld [vmem:[%s4685_s2 + $0x4d0] sm:$0xff] }
 0x280   : > { %2435 = vmatpush1.bf16.msra.mxu1 %v2434_v5  ;;  %v2470_v5 = vpack.c.bf16 %v1003_v23, %v1001_v22  ;;  %v2506_v22 = vpack.c.bf16 %v1039_v54, %v1037_v25  ;;  %v1453_v25 = vld [vmem:[%s4686_s3 + $0x188] sm:$0xff] }
 0x281   : > { %2437 = vmatprep.subr.bf16.mxu1 %v2436_v34  ;;  %v2472_v34 = vpack.c.bf16 %v1008_v26, %v1006_v29  ;;  %v1041_v29 = vld [vmem:[%s4685_s2 + $0x4e0] sm:$0xff]  ;;  %v1043_v26 = vld [vmem:[%s4685_s2 + $0x4f0] sm:$0xff] }
 0x284   : > { %2439 = vmatpush1.bf16.msra.mxu1 %v2438_v35  ;;  %v2474_v35 = vpack.c.bf16 %v1007_v32, %v1005_v31  ;;  %v2510_v31 = vpack.c.bf16 %v1043_v26, %v1041_v29  ;;  %v1456_v29 = vld [vmem:[%s4686_s3 + $0x1a0] sm:$0xff]  ;;  %v1457_v26 = vld [vmem:[%s4686_s3 + $0x1a8] sm:$0xff] }
 0x285   : > { %2441 = vmatprep.subr.bf16.mxu1 %v2440_v27  ;;  %v2476_v27 = vpack.c.bf16 %v1012_v38, %v1010_v37  ;;  %v1045_v37 = vld [vmem:[%s4685_s2 + $0x500] sm:$0xff]  ;;  %v1047_v38 = vld [vmem:[%s4685_s2 + $0x510] sm:$0xff] }
 0x288   : > { %2443 = vmatpush1.bf16.msra.mxu1 %v2442_v28  ;;  %v2478_v28 = vpack.c.bf16 %v1011_v43, %v1009_v40  ;;  %v2514_v40 = vpack.c.bf16 %v1047_v38, %v1045_v37  ;;  %v1458_v37 = vld [vmem:[%s4686_s3 + $0x1b0] sm:$0xff]  ;;  %v1459_v38 = vld [vmem:[%s4686_s3 + $0x1b8] sm:$0xff] }
 0x289   : > { %2445 = vmatprep.subr.bf16.mxu1 %v2444_v45  ;;  %v2480_v45 = vpack.c.bf16 %v1016_v44, %v1014_v41  ;;  %v1049_v41 = vld [vmem:[%s4685_s2 + $0x520] sm:$0xff]  ;;  %v1051_v44 = vld [vmem:[%s4685_s2 + $0x530] sm:$0xff] }
 0x28c   : > { %2447 = vmatpush1.bf16.msra.mxu1 %v2446_v51  ;;  %v2482_v51 = vpack.c.bf16 %v1015_v48, %v1013_v47  ;;  %v2518_v47 = vpack.c.bf16 %v1051_v44, %v1049_v41  ;;  %v1460_v41 = vld [vmem:[%s4686_s3 + $0x1c0] sm:$0xff]  ;;  %v1461_v44 = vld [vmem:[%s4686_s3 + $0x1c8] sm:$0xff] }
 0x28d   : > { %2449 = vmatprep.subr.bf16.mxu1 %v2448_v52  ;;  %v2484_v52 = vpack.c.bf16 %v1020_v50, %v1018_v49  ;;  %v1053_v49 = vld [vmem:[%s4685_s2 + $0x540] sm:$0xff]  ;;  %v1055_v50 = vld [vmem:[%s4685_s2 + $0x550] sm:$0xff] }
 0x290   : > { %2451 = vmatpush1.bf16.msra.mxu1 %v2450_v58  ;;  %v2486_v58 = vpack.c.bf16 %v1019_v55, %v1017_v53  ;;  %v2522_v53 = vpack.c.bf16 %v1055_v50, %v1053_v49 }
 0x291   : > { %2453 = vmatprep.subr.bf16.mxu1 %v2452_v59  ;;  %v2488_v59 = vpack.c.bf16 %v1024_v57, %v1022_v56  ;;  %v1057_v56 = vld [vmem:[%s4685_s2 + $0x560] sm:$0xff]  ;;  %v1059_v57 = vld [vmem:[%s4685_s2 + $0x570] sm:$0xff] }
 0x294   : > { %2455 = vmatpush1.bf16.msra.mxu1 %v2454_v63  ;;  %v1025_v63 = vld [vmem:[%s4685_s2 + $0x460] sm:$0xff] }
 0x295   : > { %2457 = vmatprep.subr.bf16.mxu1 %v2456_v30  ;;  %v1027_v30 = vld [vmem:[%s4685_s2 + $0x470] sm:$0xff] }
 0x298   : > { %2459 = vmatpush1.bf16.msra.mxu1 %v2458_v6  ;;  %v1034_v6 = vld [vmem:[%s4685_s2 + $0x4a8] sm:$0xff] }
 0x299   : > { %2461 = vmatprep.subr.bf16.mxu1 %v2460_v7  ;;  %v1036_v7 = vld [vmem:[%s4685_s2 + $0x4b8] sm:$0xff] }
 0x29a   : > { %v2500_v13 = vpack.c.bf16 %v1036_v7, %v1034_v6  ;;  %v1069_v6 = vld [vmem:[%s4685_s2 + $0x5c0] sm:$0xff]  ;;  %v1071_v7 = vld [vmem:[%s4685_s2 + $0x5d0] sm:$0xff] }
 0x29b   : > { %v2538_v14 = vpack.c.bf16 %v1071_v7, %v1069_v6  ;;  %v1408_v7 = vld [vmem:[%s4686_s3 + $0x20] sm:$0xff] }
 0x29c   : > { %2463 = vmatpush1.bf16.msra.mxu1 %v2462_v18  ;;  %v1038_v18 = vld [vmem:[%s4685_s2 + $0x4c8] sm:$0xff] }
 0x29d   : > { %2465 = vmatprep.subr.bf16.mxu1 %v2464_v20  ;;  %v1040_v20 = vld [vmem:[%s4685_s2 + $0x4d8] sm:$0xff] }
 0x29e   : > { %v2504_v15 = vpack.c.bf16 %v1040_v20, %v1038_v18  ;;  %v1073_v18 = vld [vmem:[%s4685_s2 + $0x5e0] sm:$0xff]  ;;  %v1075_v20 = vld [vmem:[%s4685_s2 + $0x5f0] sm:$0xff] }
 0x2a0   : > { %2467 = vmatpush1.bf16.msra.mxu1 %v2466_v33  ;;  %v1042_v33 = vld [vmem:[%s4685_s2 + $0x4e8] sm:$0xff] }
 0x2a1   : > { %2469 = vmatprep.subr.bf16.mxu1 %v2468_v21  ;;  %v1044_v21 = vld [vmem:[%s4685_s2 + $0x4f8] sm:$0xff] }
 0x2a2   : > { %v2508_v23 = vpack.c.bf16 %v1044_v21, %v1042_v33  ;;  %v1436_v33 = vld [vmem:[%s4686_s3 + $0x100] sm:$0xff]  ;;  %v1438_v21 = vld [vmem:[%s4686_s3 + $0x110] sm:$0xff] }
 0x2a4   : > { %2471 = vmatpush1.bf16.msra.mxu1 %v2470_v5  ;;  %v1046_v5 = vld [vmem:[%s4685_s2 + $0x508] sm:$0xff] }
 0x2a5   : > { %2473 = vmatprep.subr.bf16.mxu1 %v2472_v34  ;;  %v1048_v34 = vld [vmem:[%s4685_s2 + $0x518] sm:$0xff] }
 0x2a6   : > { %v2512_v32 = vpack.c.bf16 %v1048_v34, %v1046_v5  ;;  %v2590_v5 = vpack.c.bf16 %v1457_v26, %v1456_v29  ;;  %v1440_v34 = vld [vmem:[%s4686_s3 + $0x120] sm:$0xff]  ;;  %v1433_v26 = vld [vmem:[%s4686_s3 + $0xe8] sm:$0xff] }
 0x2a7   : > { %v1432_v29 = vld [vmem:[%s4686_s3 + $0xe0] sm:$0xff] }
 0x2a8   : > { %2475 = vmatpush1.bf16.msra.mxu1 %v2474_v35  ;;  %v1050_v35 = vld [vmem:[%s4685_s2 + $0x528] sm:$0xff] }
 0x2a9   : > { %2477 = vmatprep.subr.bf16.mxu1 %v2476_v27  ;;  %v1052_v27 = vld [vmem:[%s4685_s2 + $0x538] sm:$0xff] }
 0x2aa   : > { %v2516_v43 = vpack.c.bf16 %v1052_v27, %v1050_v35  ;;  %v2594_v35 = vpack.c.bf16 %v1459_v38, %v1458_v37  ;;  %v1442_v27 = vld [vmem:[%s4686_s3 + $0x130] sm:$0xff]  ;;  %v1435_v38 = vld [vmem:[%s4686_s3 + $0xf8] sm:$0xff] }
 0x2ab   : > { %v1434_v37 = vld [vmem:[%s4686_s3 + $0xf0] sm:$0xff] }
 0x2ac   : > { %2479 = vmatpush1.bf16.msra.mxu1 %v2478_v28  ;;  %v1054_v28 = vld [vmem:[%s4685_s2 + $0x548] sm:$0xff] }
 0x2ad   : > { %2481 = vmatprep.subr.bf16.mxu1 %v2480_v45  ;;  %v1056_v45 = vld [vmem:[%s4685_s2 + $0x558] sm:$0xff] }
 0x2ae   : > { %v2520_v48 = vpack.c.bf16 %v1056_v45, %v1054_v28  ;;  %v2598_v28 = vpack.c.bf16 %v1461_v44, %v1460_v41  ;;  %v1444_v45 = vld [vmem:[%s4686_s3 + $0x140] sm:$0xff]  ;;  %v1462_v44 = vld [vmem:[%s4686_s3 + $0x1d0] sm:$0xff] }
 0x2af   : > { %1219 = vmatmul.mubr.f32.vlgmr.msra.gmra.mrb[4].mxu1 %v3776_v16  ;;  %v2490_v16 = vpack.c.bf16 %v1023_v61, %v1021_v60  ;;  %v2526_v60 = vpack.c.bf16 %v1059_v57, %v1057_v56  ;;  %v1420_v56 = vld [vmem:[%s4686_s3 + $0x80] sm:$0xff]  ;;  %v1421_v57 = vld [vmem:[%s4686_s3 + $0x88] sm:$0xff] }
 0x2b0   : > { %1224 = vmatprep.mubr.f32.mxu1 %v869_v10  ;;  %2483 = vmatpush1.bf16.msra.mxu1 %v2482_v51  ;;  %v1028_v10 = vld [vmem:[%s4685_s2 + $0x478] sm:$0xff]  ;;  %v1058_v51 = vld [vmem:[%s4685_s2 + $0x568] sm:$0xff] }
 0x2b1   : > { %2485 = vmatprep.subr.bf16.mxu1 %v2484_v52  ;;  %v2492_v62 = vpack.c.bf16 %v1028_v10, %v1026_v8  ;;  %v1060_v52 = vld [vmem:[%s4685_s2 + $0x578] sm:$0xff]  ;;  %v1061_v8 = vld [vmem:[%s4685_s2 + $0x580] sm:$0xff]  ;;  %v1063_v10 = vld [vmem:[%s4685_s2 + $0x590] sm:$0xff] }
 0x2b2   : > { %v2524_v55 = vpack.c.bf16 %v1060_v52, %v1058_v51 }
 0x2b3   : > { %1225 = vmatmul.mubr.f32.gmra.mrb[6].mxu1 %v866_v4  ;;  %v1032_v4 = vld [vmem:[%s4685_s2 + $0x498] sm:$0xff] }
 0x2b4   : > { %2487 = vmatpush1.bf16.msra.mxu1 %v2486_v58  ;;  %1295 = vmatprep.mubr.f32.mxu1 %v3789_v19  ;;  %v2494_v19 = vpack.c.bf16 %v1027_v30, %v1025_v63  ;;  %v2496_v2 = vpack.c.bf16 %v1032_v4, %v1030_v1  ;;  %v1062_v58 = vld [vmem:[%s4685_s2 + $0x588] sm:$0xff]  ;;  %v2530_v63 = vpack.c.bf16 %v1063_v10, %v1061_v8  ;;  %v1065_v1 = vld [vmem:[%s4685_s2 + $0x5a0] sm:$0xff]  ;;  %v1067_v4 = vld [vmem:[%s4685_s2 + $0x5b0] sm:$0xff] }
 0x2b5   : > { %2489 = vmatprep.subr.bf16.mxu1 %v2488_v59  ;;  %v1064_v59 = vld [vmem:[%s4685_s2 + $0x598] sm:$0xff]  ;;  %v2534_v3 = vpack.c.bf16 %v1067_v4, %v1065_v1  ;;  %v2550_v8 = vpack.c.bf16 %v1421_v57, %v1420_v56  ;;  %v1404_v10 = vld [vmem:[%s4686_s3] sm:$0xff] }
 0x2b6   : > { %v2528_v61 = vpack.c.bf16 %v1064_v59, %v1062_v58  ;;  %v1484_v57 = vld [vmem:[%s4686_s3 + $0x280] sm:$0xff] }
 0x2b8   : > { %2491 = vmatpush1.bf16.msra.mxu1 %v2490_v16  ;;  %v1066_v16 = vld [vmem:[%s4685_s2 + $0x5a8] sm:$0xff] }
 0x2b9   : > { %2493 = vmatprep.subr.bf16.mxu1 %v2492_v62  ;;  %v1068_v62 = vld [vmem:[%s4685_s2 + $0x5b8] sm:$0xff] }
 0x2ba   : > { %v2532_v30 = vpack.c.bf16 %v1068_v62, %v1066_v16  ;;  %v1405_v16 = vld [vmem:[%s4686_s3 + $0x8] sm:$0xff]  ;;  %v1422_v62 = vld [vmem:[%s4686_s3 + $0x90] sm:$0xff] }
 0x2bb   : > { %v2552_v1 = vpack.c.bf16 %v1405_v16, %v1404_v10  ;;  %v1450_v10 = vld [vmem:[%s4686_s3 + $0x170] sm:$0xff]  ;;  %v1451_v16 = vld [vmem:[%s4686_s3 + $0x178] sm:$0xff] }
 0x2bc   : > { %2495 = vmatpush1.bf16.msra.mxu1 %v2494_v19  ;;  %v1070_v19 = vld [vmem:[%s4685_s2 + $0x5c8] sm:$0xff] }
 0x2bd   : > { %2497 = vmatprep.subr.bf16.mxu1 %v2496_v2  ;;  %v1072_v2 = vld [vmem:[%s4685_s2 + $0x5d8] sm:$0xff] }
 0x2be   : > { %v2536_v39 = vpack.c.bf16 %v1072_v2, %v1070_v19  ;;  %v1406_v19 = vld [vmem:[%s4686_s3 + $0x10] sm:$0xff]  ;;  %v1407_v2 = vld [vmem:[%s4686_s3 + $0x18] sm:$0xff] }
 0x2c0   : > { %2499 = vmatpush1.bf16.msra.mxu1 %v2498_v9  ;;  %v1074_v9 = vld [vmem:[%s4685_s2 + $0x5e8] sm:$0xff] }
 0x2c1   : > { %2501 = vmatprep.subr.bf16.mxu1 %v2500_v13  ;;  %v1076_v13 = vld [vmem:[%s4685_s2 + $0x5f8] sm:$0xff] }
 0x2c2   : > { %v2540_v46 = vpack.c.bf16 %v1076_v13, %v1074_v9  ;;  %v1409_v9 = vld [vmem:[%s4686_s3 + $0x28] sm:$0xff]  ;;  %v1426_v13 = vld [vmem:[%s4686_s3 + $0xb0] sm:$0xff] }
 0x2c4   : > { %2503 = vmatpush1.bf16.msra.mxu1 %v2502_v42  ;;  %v2542_v42 = vpack.c.bf16 %v1075_v20, %v1073_v18  ;;  %v1410_v20 = vld [vmem:[%s4686_s3 + $0x30] sm:$0xff] }
 0x2c5   : > { %2505 = vmatprep.subr.bf16.mxu1 %v2504_v15  ;;  %v1452_v15 = vld [vmem:[%s4686_s3 + $0x180] sm:$0xff] }
 0x2c6   : > { %v2582_v54 = vpack.c.bf16 %v1453_v25, %v1452_v15  ;;  %v1428_v15 = vld [vmem:[%s4686_s3 + $0xc0] sm:$0xff]  ;;  %v1429_v25 = vld [vmem:[%s4686_s3 + $0xc8] sm:$0xff] }
 0x2c8   : > { %2507 = vmatpush1.bf16.msra.mxu1 %v2506_v22  ;;  %v1439_v22 = vld [vmem:[%s4686_s3 + $0x118] sm:$0xff] }
 0x2c9   : > { %2509 = vmatprep.subr.bf16.mxu1 %v2508_v23  ;;  %v2588_v23 = vpack.c.bf16 %v1439_v22, %v1438_v21  ;;  %v1414_v22 = vld [vmem:[%s4686_s3 + $0x50] sm:$0xff] }
 0x2cc   : > { %2511 = vmatpush1.bf16.msra.mxu1 %v2510_v31  ;;  %v1441_v31 = vld [vmem:[%s4686_s3 + $0x128] sm:$0xff] }
 0x2cd   : > { %2513 = vmatprep.subr.bf16.mxu1 %v2512_v32  ;;  %v2592_v32 = vpack.c.bf16 %v1441_v31, %v1440_v34  ;;  %v2574_v34 = vpack.c.bf16 %v1433_v26, %v1432_v29  ;;  %v1416_v31 = vld [vmem:[%s4686_s3 + $0x60] sm:$0xff]  ;;  %v1477_v29 = vld [vmem:[%s4686_s3 + $0x248] sm:$0xff]  ;;  %v1494_v26 = vld [vmem:[%s4686_s3 + $0x2d0] sm:$0xff] }
 0x2d0   : > { %2515 = vmatpush1.bf16.msra.mxu1 %v2514_v40  ;;  %v1443_v40 = vld [vmem:[%s4686_s3 + $0x138] sm:$0xff] }
 0x2d1   : > { %2517 = vmatprep.subr.bf16.mxu1 %v2516_v43  ;;  %v2596_v43 = vpack.c.bf16 %v1443_v40, %v1442_v27  ;;  %v2578_v27 = vpack.c.bf16 %v1435_v38, %v1434_v37  ;;  %v1418_v40 = vld [vmem:[%s4686_s3 + $0x70] sm:$0xff]  ;;  %v1479_v37 = vld [vmem:[%s4686_s3 + $0x258] sm:$0xff]  ;;  %v1496_v38 = vld [vmem:[%s4686_s3 + $0x2e0] sm:$0xff] }
 0x2d4   : > { %2519 = vmatpush1.bf16.msra.mxu1 %v2518_v47  ;;  %v1445_v47 = vld [vmem:[%s4686_s3 + $0x148] sm:$0xff] }
 0x2d5   : > { %2521 = vmatprep.subr.bf16.mxu1 %v2520_v48  ;;  %v2600_v48 = vpack.c.bf16 %v1445_v47, %v1444_v45  ;;  %v1446_v47 = vld [vmem:[%s4686_s3 + $0x150] sm:$0xff] }
 0x2d8   : > { %2523 = vmatpush1.bf16.msra.mxu1 %v2522_v53 }
 0x2d9   : > { %2525 = vmatprep.subr.bf16.mxu1 %v2524_v55 }
 0x2dc   : > { %2527 = vmatpush1.bf16.msra.mxu1 %v2526_v60 }
 0x2dd   : > { %2529 = vmatprep.subr.bf16.mxu1 %v2528_v61 }
 0x2e0   : > { %2531 = vmatpush1.bf16.msra.mxu1 %v2530_v63  ;;  %v1423_v63 = vld [vmem:[%s4686_s3 + $0x98] sm:$0xff] }
 0x2e1   : > { %2533 = vmatprep.subr.bf16.mxu1 %v2532_v30  ;;  %v1312_v30 = vld [vmem:[%s4689_s6] sm:$0x3f]  ;;  %v2554_v4 = vpack.c.bf16 %v1423_v63, %v1422_v62  ;;  %v2612_v62 = vpack.c.bf16 %v1451_v16, %v1450_v10  ;;  %v1751_v10 = vld [vmem:[%s4687_s4 + $0x108] sm:$0xff]  ;;  %v1736_v16 = vld [vmem:[%s4687_s4 + $0x90] sm:$0xff] }
 0x2e2   : > { %v1468_v63 = vld [vmem:[%s4686_s3 + $0x200] sm:$0xff] }
 0x2e4   : > { %2535 = vmatpush1.bf16.msra.mxu1 %v2534_v3  ;;  %v1425_v3 = vld [vmem:[%s4686_s3 + $0xa8] sm:$0xff] }
 0x2e5   : > { %2537 = vmatprep.subr.bf16.mxu1 %v2536_v39  ;;  %v2556_v39 = vpack.c.bf16 %v1407_v2, %v1406_v19  ;;  %v2558_v6 = vpack.c.bf16 %v1425_v3, %v1424_v12 }
 0x2e8   : > { %2539 = vmatpush1.bf16.msra.mxu1 %v2538_v14  ;;  %v1427_v14 = vld [vmem:[%s4686_s3 + $0xb8] sm:$0xff] }
 0x2e9   : > { %2541 = vmatprep.subr.bf16.mxu1 %v2540_v46  ;;  %v2560_v46 = vpack.c.bf16 %v1409_v9, %v1408_v7  ;;  %v2562_v18 = vpack.c.bf16 %v1427_v14, %v1426_v13  ;;  %v1488_v13 = vld [vmem:[%s4686_s3 + $0x2a0] sm:$0xff]  ;;  %v1489_v14 = vld [vmem:[%s4686_s3 + $0x2a8] sm:$0xff] }
 0x2ec   : > { %2543 = vmatpush1.bf16.msra.mxu1 %v2542_v42  ;;  %v1411_v42 = vld [vmem:[%s4686_s3 + $0x38] sm:$0xff] }
 0x2ed   : > { %2583 = vmatprep.subr.bf16.mxu1 %v2582_v54  ;;  %v2564_v54 = vpack.c.bf16 %v1411_v42, %v1410_v20  ;;  %v2622_v20 = vpack.c.bf16 %v1489_v14, %v1488_v13  ;;  %v1472_v42 = vld [vmem:[%s4686_s3 + $0x220] sm:$0xff]  ;;  %v1739_v13 = vld [vmem:[%s4687_s4 + $0xa8] sm:$0xff] }
 0x2ee   : > { %v1770_v14 = vld [vmem:[%s4687_s4 + $0x1a0] sm:$0xff] }
 0x2ef   : > { %1296 = vmatmul.mubr.f32.vlgmr.msra.gmra.mrb[4].mxu1 %v3781_v17 }
 0x2f0   : > { %1301 = vmatprep.mubr.f32.mxu1 %v879_v11  ;;  %v2584_v11 = vpack.c.bf16 %v1437_v36, %v1436_v33  ;;  %v2566_v33 = vpack.c.bf16 %v1429_v25, %v1428_v15  ;;  %v1412_v36 = vld [vmem:[%s4686_s3 + $0x40] sm:$0xff]  ;;  %v1473_v15 = vld [vmem:[%s4686_s3 + $0x228] sm:$0xff]  ;;  %v1490_v25 = vld [vmem:[%s4686_s3 + $0x2b0] sm:$0xff] }
 0x2f2   : > { %2585 = vmatpush3.bf16.msra.mxu1 %v2584_v11  ;;  %v1413_v11 = vld [vmem:[%s4686_s3 + $0x48] sm:$0xff] }
 0x2f3   : > { %1302 = vmatmul.mubr.f32.gmra.mrb[6].mxu1 %v876_v24  ;;  %v1455_v24 = vld [vmem:[%s4686_s3 + $0x198] sm:$0xff] }
 0x2f4   : > { %v2586_v17 = vpack.c.bf16 %v1455_v24, %v1454_v0  ;;  %v1430_v0 = vld [vmem:[%s4686_s3 + $0xd0] sm:$0xff]  ;;  %v1431_v24 = vld [vmem:[%s4686_s3 + $0xd8] sm:$0xff] }
 0x2f5   : > { %v2570_v21 = vpack.c.bf16 %v1431_v24, %v1430_v0  ;;  %v1475_v0 = vld [vmem:[%s4686_s3 + $0x238] sm:$0xff]  ;;  %v1492_v24 = vld [vmem:[%s4686_s3 + $0x2c0] sm:$0xff] }
 0x2f6   : > { %2587 = vmatprep.subr.bf16.mxu1 %v2586_v17  ;;  %v2568_v17 = vpack.c.bf16 %v1413_v11, %v1412_v36  ;;  %v1474_v11 = vld [vmem:[%s4686_s3 + $0x230] sm:$0xff] }
 0x2f7   : > { %2589 = vmatpush3.bf16.msra.mxu1 %v2588_v23  ;;  %v1415_v23 = vld [vmem:[%s4686_s3 + $0x58] sm:$0xff] }
 0x2f8   : > { %2591 = vmatprep.subr.bf16.mxu1 %v2590_v5  ;;  %v2572_v5 = vpack.c.bf16 %v1415_v23, %v1414_v22  ;;  %v1476_v23 = vld [vmem:[%s4686_s3 + $0x240] sm:$0xff] }
 0x2fb   : > { %2593 = vmatpush3.bf16.msra.mxu1 %v2592_v32  ;;  %v1417_v32 = vld [vmem:[%s4686_s3 + $0x68] sm:$0xff] }
 0x2fc   : > { %2595 = vmatprep.subr.bf16.mxu1 %v2594_v35  ;;  %v2576_v35 = vpack.c.bf16 %v1417_v32, %v1416_v31  ;;  %v1478_v32 = vld [vmem:[%s4686_s3 + $0x250] sm:$0xff] }
 0x2ff   : > { %2597 = vmatpush3.bf16.msra.mxu1 %v2596_v43  ;;  %v1419_v43 = vld [vmem:[%s4686_s3 + $0x78] sm:$0xff] }
 0x300   : > { %2599 = vmatprep.subr.bf16.mxu1 %v2598_v28  ;;  %v2580_v41 = vpack.c.bf16 %v1419_v43, %v1418_v40  ;;  %v1463_v28 = vld [vmem:[%s4686_s3 + $0x1d8] sm:$0xff]  ;;  %v1480_v43 = vld [vmem:[%s4686_s3 + $0x260] sm:$0xff] }
 0x301   : > { %v2602_v45 = vpack.c.bf16 %v1463_v28, %v1462_v44  ;;  %v1498_v44 = vld [vmem:[%s4686_s3 + $0x2f0] sm:$0xff]  ;;  %v1499_v28 = vld [vmem:[%s4686_s3 + $0x2f8] sm:$0xff] }
 0x303   : > { %2601 = vmatpush3.bf16.msra.mxu1 %v2600_v48  ;;  %v1447_v48 = vld [vmem:[%s4686_s3 + $0x158] sm:$0xff] }
 0x304   : > { %2603 = vmatprep.subr.bf16.mxu1 %v2602_v45 }
 0x3c2   : > { %v1297_v49 = vpop.f32.mrb[4].mxu1 }
 0x3c3   : > { %v1299_v50 = vpop.f32.mrb[5].mxu1  ;;  %v1308_v52 = vmax.f32 %v1297_v49, 0.0  ;;  %v2604_v49 = vpack.c.bf16 %v1447_v48, %v1446_v47  ;;  %v2642_v47 = vpack.c.bf16 %v1499_v28, %v1498_v44  ;;  %v1482_v48 = vld [vmem:[%s4686_s3 + $0x270] sm:$0xff]  ;;  %v1759_v28 = vld [vmem:[%s4687_s4 + $0x148] sm:$0xff] }
 0x3c4   : > { %v1309_v58 = vmax.f32 %v1299_v50, 0.0  ;;  %v1464_v50 = vld [vmem:[%s4686_s3 + $0x1e0] sm:$0xff] }
 0x3c5   : > { %2605 = vmatpush3.bf16.msra.mxu1 %v2604_v49  ;;  %v1483_v49 = vld [vmem:[%s4686_s3 + $0x278] sm:$0xff] }
 0x3c6   : > { %v1303_v51 = vpop.f32.mrb[6].mxu1 }
 0x3c7   : > { %v1310_v53 = vmax.f32 %v1303_v51, 0.0  ;;  %v1305_v55 = vpop.f32.mrb[7].mxu1  ;;  %v1465_v51 = vld [vmem:[%s4686_s3 + $0x1e8] sm:$0xff] }
 0x3c8   : > { %v1311_v59 = vmax.f32 %v1305_v55, 0.0  ;;  %v1449_v55 = vld [vmem:[%s4686_s3 + $0x168] sm:$0xff] }
 0x3c9   : > { %v2547_v60 = vpack.c.bf16 %v1310_v53, %v1308_v52  ;;  %v2606_v52 = vpack.c.bf16 %v1465_v51, %v1464_v50  ;;  %v1448_v53 = vld [vmem:[%s4686_s3 + $0x160] sm:$0xff]  ;;  %v2644_v50 = vpack.c.bf16 %v1483_v49, %v1482_v48  ;;  %v1776_v48 = vld [vmem:[%s4687_s4 + $0x1d0] sm:$0xff]  ;;  %v1777_v49 = vld [vmem:[%s4687_s4 + $0x1d8] sm:$0xff] }
 0x3ca   : > { %v2544_v61 = vpack.c.bf16 %v1311_v59, %v1309_v58  ;;  %v2608_v56 = vpack.c.bf16 %v1449_v55, %v1448_v53  ;;  %v1485_v58 = vld [vmem:[%s4686_s3 + $0x288] sm:$0xff]  ;;  %v1466_v59 = vld [vmem:[%s4686_s3 + $0x1f0] sm:$0xff]  ;;  %v1766_v55 = vld [vmem:[%s4687_s4 + $0x180] sm:$0xff] }
 0x3cb   : > { %2607 = vmatprep.subr.bf16.mxu1 %v2606_v52  ;;  %v1734_v52 = vld [vmem:[%s4687_s4 + $0x80] sm:$0xff]  ;;  %v1735_v53 = vld [vmem:[%s4687_s4 + $0x88] sm:$0xff] }
 0x3cc   : > { %2546 = vmatprep.subr.msk.bf16.mxu0 %vm3518_vm5, %v2544_v61  ;;  %2609 = vmatpush3.bf16.msra.mxu1 %v2608_v56  ;;  %v1467_v61 = vld [vmem:[%s4686_s3 + $0x1f8] sm:$0xff]  ;;  %v2646_v56 = vpack.c.bf16 %v1735_v53, %v1734_v52  ;;  %v2698_v53 = vpack.c.bf16 %v1777_v49, %v1776_v48 }
 0x3cd   : > { %2549 = vmatpush1.bf16.msk.msra.mxu0 %vm3518_vm5, %v2547_v60  ;;  %v2614_v60 = vpack.c.bf16 %v1485_v58, %v1484_v57  ;;  %v1767_v57 = vld [vmem:[%s4687_s4 + $0x188] sm:$0xff] }
 0x3ce   : > { %2551 = vmatprep.subr.bf16.mxu0 %v2550_v8  ;;  %v2610_v8 = vpack.c.bf16 %v1467_v61, %v1466_v59  ;;  %v2678_v58 = vpack.c.bf16 %v1767_v57, %v1766_v55  ;;  %v1718_v59 = vld [vmem:[%s4687_s4] sm:$0xff]  ;;  %v1728_v55 = vld [vmem:[%s4687_s4 + $0x50] sm:$0xff] }
 0x3cf   : > { %v1750_v61 = vld [vmem:[%s4687_s4 + $0x100] sm:$0xff]  ;;  %v1760_v57 = vld [vmem:[%s4687_s4 + $0x150] sm:$0xff] }
 0x3d0   : > { %2003 = vmatmul.mubr.msk.f32.vlgmr.msra.gmra.mrb[8].mxu0 %vm1313_vm7, %v1312_v30  ;;  %2611 = vmatprep.subr.bf16.mxu1 %v2610_v8  ;;  %v1469_v30 = vld [vmem:[%s4686_s3 + $0x208] sm:$0xff] }
 0x3d1   : > { %2553 = vmatpush3.bf16.msra.mxu0 %v2552_v1  ;;  %2613 = vmatpush3.bf16.msra.mxu1 %v2612_v62  ;;  %v1486_v1 = vld [vmem:[%s4686_s3 + $0x290] sm:$0xff]  ;;  %v2616_v2 = vpack.c.bf16 %v1469_v30, %v1468_v63  ;;  %v1737_v62 = vld [vmem:[%s4687_s4 + $0x98] sm:$0xff]  ;;  %v2680_v63 = vpack.c.bf16 %v1751_v10, %v1750_v61  ;;  %v1746_v61 = vld [vmem:[%s4687_s4 + $0xe0] sm:$0xff] }
 0x3d2   : > { %2555 = vmatprep.subr.bf16.mxu0 %v2554_v4  ;;  %v1487_v4 = vld [vmem:[%s4686_s3 + $0x298] sm:$0xff]  ;;  %2647 = vmatprep.subr.bf16.mxu1 %v2646_v56  ;;  %v2650_v30 = vpack.c.bf16 %v1737_v62, %v1736_v16  ;;  %v1778_v10 = vld [vmem:[%s4687_s4 + $0x1e0] sm:$0xff]  ;;  %v1779_v62 = vld [vmem:[%s4687_s4 + $0x1e8] sm:$0xff] }
 0x3d3   : > { %v2618_v3 = vpack.c.bf16 %v1487_v4, %v1486_v1  ;;  %v1768_v1 = vld [vmem:[%s4687_s4 + $0x190] sm:$0xff]  ;;  %v1769_v4 = vld [vmem:[%s4687_s4 + $0x198] sm:$0xff] }
 0x3d4   : > { %v1729_v56 = vld [vmem:[%s4687_s4 + $0x58] sm:$0xff] }
 0x3d5   : > { %2557 = vmatpush3.bf16.msra.mxu0 %v2556_v39  ;;  %v1470_v39 = vld [vmem:[%s4686_s3 + $0x210] sm:$0xff] }
 0x3d6   : > { %2559 = vmatprep.subr.bf16.mxu0 %v2558_v6  ;;  %v1471_v6 = vld [vmem:[%s4686_s3 + $0x218] sm:$0xff] }
 0x3d9   : > { %2561 = vmatpush3.bf16.msra.mxu0 %v2560_v46 }
 0x3da   : > { %2563 = vmatprep.subr.bf16.mxu0 %v2562_v18  ;;  %v2620_v18 = vpack.c.bf16 %v1471_v6, %v1470_v39  ;;  %v1753_v39 = vld [vmem:[%s4687_s4 + $0x118] sm:$0xff] }
 0x3dd   : > { %2565 = vmatpush3.bf16.msra.mxu0 %v2564_v54  ;;  %v1491_v54 = vld [vmem:[%s4686_s3 + $0x2b8] sm:$0xff] }
 0x3de   : > { %2567 = vmatprep.subr.bf16.mxu0 %v2566_v33  ;;  %v2624_v33 = vpack.c.bf16 %v1473_v15, %v1472_v42  ;;  %v2626_v36 = vpack.c.bf16 %v1491_v54, %v1490_v25  ;;  %v1723_v42 = vld [vmem:[%s4687_s4 + $0x28] sm:$0xff]  ;;  %v1754_v25 = vld [vmem:[%s4687_s4 + $0x120] sm:$0xff] }
 0x3df   : > { %v1755_v54 = vld [vmem:[%s4687_s4 + $0x128] sm:$0xff] }
 0x3e1   : > { %2569 = vmatpush3.bf16.msra.mxu0 %v2568_v17  ;;  %v1493_v17 = vld [vmem:[%s4686_s3 + $0x2c8] sm:$0xff] }
 0x3e2   : > { %2571 = vmatprep.subr.bf16.mxu0 %v2570_v21  ;;  %v2628_v21 = vpack.c.bf16 %v1475_v0, %v1474_v11  ;;  %v2630_v22 = vpack.c.bf16 %v1493_v17, %v1492_v24  ;;  %v1741_v11 = vld [vmem:[%s4687_s4 + $0xb8] sm:$0xff]  ;;  %v1772_v0 = vld [vmem:[%s4687_s4 + $0x1b0] sm:$0xff]  ;;  %v2688_v17 = vpack.c.bf16 %v1755_v54, %v1754_v25 }
 0x3e3   : > { %v1773_v24 = vld [vmem:[%s4687_s4 + $0x1b8] sm:$0xff] }
 0x3e5   : > { %2573 = vmatpush3.bf16.msra.mxu0 %v2572_v5  ;;  %v1495_v5 = vld [vmem:[%s4686_s3 + $0x2d8] sm:$0xff] }
 0x3e6   : > { %2575 = vmatprep.subr.bf16.mxu0 %v2574_v34  ;;  %v2632_v34 = vpack.c.bf16 %v1477_v29, %v1476_v23  ;;  %v2634_v31 = vpack.c.bf16 %v1495_v5, %v1494_v26  ;;  %v1725_v23 = vld [vmem:[%s4687_s4 + $0x38] sm:$0xff]  ;;  %v1756_v29 = vld [vmem:[%s4687_s4 + $0x130] sm:$0xff]  ;;  %v2690_v26 = vpack.c.bf16 %v1773_v24, %v1772_v0 }
 0x3e7   : > { %v1757_v5 = vld [vmem:[%s4687_s4 + $0x138] sm:$0xff] }
 0x3e9   : > { %2577 = vmatpush3.bf16.msra.mxu0 %v2576_v35  ;;  %v1497_v35 = vld [vmem:[%s4686_s3 + $0x2e8] sm:$0xff] }
 0x3ea   : > { %2579 = vmatprep.subr.bf16.mxu0 %v2578_v27  ;;  %v2636_v27 = vpack.c.bf16 %v1479_v37, %v1478_v32  ;;  %v2638_v40 = vpack.c.bf16 %v1497_v35, %v1496_v38  ;;  %v1774_v32 = vld [vmem:[%s4687_s4 + $0x1c0] sm:$0xff]  ;;  %v1775_v37 = vld [vmem:[%s4687_s4 + $0x1c8] sm:$0xff]  ;;  %v2692_v35 = vpack.c.bf16 %v1757_v5, %v1756_v29 }
 0x3eb   : > { %v2694_v44 = vpack.c.bf16 %v1775_v37, %v1774_v32 }
 0x3ed   : > { %2581 = vmatpush3.bf16.msra.mxu0 %v2580_v41  ;;  %v1481_v41 = vld [vmem:[%s4686_s3 + $0x268] sm:$0xff] }
 0x3ee   : > { %2615 = vmatprep.subr.bf16.mxu0 %v2614_v60  ;;  %v2640_v45 = vpack.c.bf16 %v1481_v41, %v1480_v43  ;;  %v1719_v60 = vld [vmem:[%s4687_s4 + $0x8] sm:$0xff]  ;;  %v1758_v41 = vld [vmem:[%s4687_s4 + $0x140] sm:$0xff] }
 0x3ef   : > { %v2648_v8 = vpack.c.bf16 %v1719_v60, %v1718_v59  ;;  %v1727_v43 = vld [vmem:[%s4687_s4 + $0x48] sm:$0xff]  ;;  %v1761_v59 = vld [vmem:[%s4687_s4 + $0x158] sm:$0xff] }
 0x3f0   : > { %v2700_v60 = vpack.c.bf16 %v1761_v59, %v1760_v57 }
 0x4a3   : > { %v4361_v19 = vpop.f32.mrb[8].mxu0 }
 0x4a4   : > { %v1391_v12 = vpop.f32.mrb[9].mxu0  ;;  %v1396_v46 = vrot.slane %v4361_v19, 1  ;;  %v1400_v51 = vrot.slane %v4361_v19, 2 }
 0x4a5   : > { %v1397_v7 = vrot.slane %v1391_v12, 1  ;;  %v1401_v9 = vrot.slane %v1391_v12, 2  ;;  %1564 = vmatprep.mubr.f32.mxu0 %v1391_v12  ;;  %v1721_v12 = vld [vmem:[%s4687_s4 + $0x18] sm:$0xff] }
 0x4a6   : > { %1565 = vmatmul.mubr.f32.vlgmr.msra.gmra.mrb[10].mxu0 %v4361_v19  ;;  %v1720_v19 = vld [vmem:[%s4687_s4 + $0x10] sm:$0xff] }
 0x4a7   : > { %2617 = vmatpush3.bf16.msra.mxu0 %v2616_v2  ;;  %1634 = vmatprep.mubr.f32.mxu1 %v1397_v7  ;;  %v2682_v2 = vpack.c.bf16 %v1769_v4, %v1768_v1  ;;  %v2652_v6 = vpack.c.bf16 %v1721_v12, %v1720_v19  ;;  %v2702_v1 = vpack.c.bf16 %v1779_v62, %v1778_v10  ;;  %v1762_v19 = vld [vmem:[%s4687_s4 + $0x160] sm:$0xff] }
 0x4a8   : > { %2619 = vmatprep.subr.bf16.mxu0 %v2618_v3  ;;  %1635 = vmatmul.mubr.f32.vlgmr.msra.gmra.mrb[8].mxu1 %v1396_v46  ;;  %v1752_v3 = vld [vmem:[%s4687_s4 + $0x110] sm:$0xff] }
 0x4a9   : > { %1704 = vmatprep.mubr.f32.mxu0 %v1401_v9  ;;  %2649 = vmatpush3.bf16.msra.mxu1 %v2648_v8  ;;  %v2684_v7 = vpack.c.bf16 %v1753_v39, %v1752_v3  ;;  %v1738_v9 = vld [vmem:[%s4687_s4 + $0xa0] sm:$0xff]  ;;  %v1747_v8 = vld [vmem:[%s4687_s4 + $0xe8] sm:$0xff]  ;;  %v1748_v3 = vld [vmem:[%s4687_s4 + $0xf0] sm:$0xff] }
 0x4aa   : > { %2651 = vmatprep.subr.bf16.mxu1 %v2650_v30  ;;  %v2654_v46 = vpack.c.bf16 %v1739_v13, %v1738_v9  ;;  %v2670_v16 = vpack.c.bf16 %v1747_v8, %v1746_v61  ;;  %v1731_v30 = vld [vmem:[%s4687_s4 + $0x68] sm:$0xff]  ;;  %v1749_v39 = vld [vmem:[%s4687_s4 + $0xf8] sm:$0xff]  ;;  %v1732_v13 = vld [vmem:[%s4687_s4 + $0x70] sm:$0xff] }
 0x4ab   : > { %2621 = vmatpush3.bf16.msra.mxu0 %v2620_v18  ;;  %v1771_v18 = vld [vmem:[%s4687_s4 + $0x1a8] sm:$0xff]  ;;  %v1781_v9 = vld [vmem:[%s4687_s4 + $0x1f8] sm:$0xff] }
 0x4ac   : > { %2623 = vmatprep.subr.bf16.mxu0 %v2622_v20  ;;  %v1722_v20 = vld [vmem:[%s4687_s4 + $0x20] sm:$0xff]  ;;  %v2686_v15 = vpack.c.bf16 %v1771_v18, %v1770_v14  ;;  %v1733_v14 = vld [vmem:[%s4687_s4 + $0x78] sm:$0xff] }
 0x4ad   : > { %2653 = vmatpush3.bf16.msra.mxu1 %v2652_v6  ;;  %v1780_v6 = vld [vmem:[%s4687_s4 + $0x1f0] sm:$0xff]  ;;  %v2676_v18 = vpack.c.bf16 %v1733_v14, %v1732_v13 }
 0x4ae   : > { %2655 = vmatprep.subr.bf16.mxu1 %v2654_v46  ;;  %v2706_v46 = vpack.c.bf16 %v1781_v9, %v1780_v6 }
 0x4af   : > { %2625 = vmatpush3.bf16.msra.mxu0 %v2624_v33  ;;  %v1740_v33 = vld [vmem:[%s4687_s4 + $0xb0] sm:$0xff] }
 0x4b0   : > { %2627 = vmatprep.subr.bf16.mxu0 %v2626_v36  ;;  %v2656_v36 = vpack.c.bf16 %v1723_v42, %v1722_v20  ;;  %v1764_v20 = vld [vmem:[%s4687_s4 + $0x170] sm:$0xff]  ;;  %v1765_v42 = vld [vmem:[%s4687_s4 + $0x178] sm:$0xff] }
 0x4b2   : > { %2657 = vmatpush3.bf16.msra.mxu1 %v2656_v36 }
 0x4b3   : > { %2629 = vmatpush3.bf16.msra.mxu0 %v2628_v21  ;;  %v2658_v21 = vpack.c.bf16 %v1741_v11, %v1740_v33 }
 0x4b4   : > { %2631 = vmatprep.subr.bf16.mxu0 %v2630_v22  ;;  %v1724_v22 = vld [vmem:[%s4687_s4 + $0x30] sm:$0xff] }
 0x4b5   : > { %v2660_v38 = vpack.c.bf16 %v1725_v23, %v1724_v22  ;;  %2659 = vmatprep.subr.bf16.mxu1 %v2658_v21 }
 0x4b7   : > { %2633 = vmatpush3.bf16.msra.mxu0 %v2632_v34  ;;  %v1742_v34 = vld [vmem:[%s4687_s4 + $0xc0] sm:$0xff]  ;;  %2661 = vmatpush3.bf16.msra.mxu1 %v2660_v38 }
 0x4b8   : > { %2635 = vmatprep.subr.bf16.mxu0 %v2634_v31  ;;  %v1743_v31 = vld [vmem:[%s4687_s4 + $0xc8] sm:$0xff] }
 0x4bb   : > { %2637 = vmatpush3.bf16.msra.mxu0 %v2636_v27  ;;  %v2662_v27 = vpack.c.bf16 %v1743_v31, %v1742_v34 }
 0x4bc   : > { %2639 = vmatprep.subr.bf16.mxu0 %v2638_v40  ;;  %v1726_v40 = vld [vmem:[%s4687_s4 + $0x40] sm:$0xff] }
 0x4bd   : > { %2663 = vmatprep.subr.bf16.mxu1 %v2662_v27 }
 0x4bf   : > { %2641 = vmatpush3.bf16.msra.mxu0 %v2640_v45  ;;  %v1744_v45 = vld [vmem:[%s4687_s4 + $0xd0] sm:$0xff] }
 0x4c0   : > { %2643 = vmatprep.subr.bf16.mxu0 %v2642_v47  ;;  %v1745_v47 = vld [vmem:[%s4687_s4 + $0xd8] sm:$0xff] }
 0x4c1   : > { %v2666_v52 = vpack.c.bf16 %v1745_v47, %v1744_v45 }
 0x4c3   : > { %2645 = vmatpush3.bf16.msra.mxu0 %v2644_v50  ;;  %v2664_v50 = vpack.c.bf16 %v1727_v43, %v1726_v40 }
 0x4c4   : > { %2679 = vmatprep.subr.bf16.mxu0 %v2678_v58  ;;  %v2668_v58 = vpack.c.bf16 %v1729_v56, %v1728_v55 }
 0x4c5   : > { %2665 = vmatpush3.bf16.msra.mxu1 %v2664_v50 }
 0x4c6   : > { %1705 = vmatmul.mubr.f32.vlgmr.msra.gmra.mrb[12].mxu0 %v1400_v51  ;;  %v2696_v51 = vpack.c.bf16 %v1759_v28, %v1758_v41  ;;  %2667 = vmatprep.subr.bf16.mxu1 %v2666_v52 }
 0x4c7   : > { %2681 = vmatpush3.bf16.msra.mxu0 %v2680_v63  ;;  %v1730_v63 = vld [vmem:[%s4687_s4 + $0x60] sm:$0xff] }
 0x4c8   : > { %2683 = vmatprep.subr.bf16.mxu0 %v2682_v2  ;;  %v2672_v4 = vpack.c.bf16 %v1731_v30, %v1730_v63  ;;  %v1763_v2 = vld [vmem:[%s4687_s4 + $0x168] sm:$0xff] }
 0x4c9   : > { %2669 = vmatpush3.bf16.msra.mxu1 %v2668_v58  ;;  %v2704_v12 = vpack.c.bf16 %v1763_v2, %v1762_v19 }
 0x4ca   : > { %2671 = vmatprep.subr.bf16.mxu1 %v2670_v16 }
 0x4cb   : > { %2685 = vmatpush3.bf16.msra.mxu0 %v2684_v7  ;;  %v2674_v7 = vpack.c.bf16 %v1749_v39, %v1748_v3 }
 0x4cc   : > { %2687 = vmatprep.subr.bf16.mxu0 %v2686_v15  ;;  %v2708_v15 = vpack.c.bf16 %v1765_v42, %v1764_v20 }
 0x4cd   : > { %2673 = vmatpush3.bf16.msra.mxu1 %v2672_v4 }
 0x4ce   : > { %2675 = vmatprep.subr.bf16.mxu1 %v2674_v7 }
 0x4cf   : > { %2689 = vmatpush3.bf16.msra.mxu0 %v2688_v17 }
 0x4d0   : > { %2691 = vmatprep.subr.bf16.mxu0 %v2690_v26 }
 0x4d1   : > { %2677 = vmatpush3.bf16.msra.mxu1 %v2676_v18 }
 0x4d3   : > { %2693 = vmatpush3.bf16.msra.mxu0 %v2692_v35 }
 0x4d4   : > { %2695 = vmatprep.subr.bf16.mxu0 %v2694_v44 }
 0x4d7   : > { %2697 = vmatpush3.bf16.msra.mxu0 %v2696_v51 }
 0x4d8   : > { %2699 = vmatprep.subr.bf16.mxu0 %v2698_v53 }
 0x4db   : > { %2701 = vmatpush3.bf16.msra.mxu0 %v2700_v60 }
 0x4dc   : > { %2703 = vmatprep.subr.bf16.mxu0 %v2702_v1 }
 0x4df   : > { %2705 = vmatpush3.bf16.msra.mxu0 %v2704_v12 }
 0x4e0   : > { %2707 = vmatprep.subr.bf16.mxu0 %v2706_v46 }
 0x4e3   : > { %2709 = vmatpush3.bf16.msra.mxu0 %v2708_v15 }
 0x579   : > { %v2039_v25 = vpop.f32.mrb[10].mxu0 }
 0x57a   : > { %v2040_v54 = vpop.f32.mrb[11].mxu0 }
 0x57b   : > { %v2074_v33 = vpop.f32.mrb[8].mxu1  ;;  %v2041_v36 = vadd.f32 %v2040_v54, %v2039_v25 }
 0x57c   : > { %v2075_v11 = vpop.f32.mrb[9].mxu1 }
 0x57d   : > { %v2076_v0 = vadd.f32 %v2075_v11, %v2074_v33 }
 0x57f   : > { %v1637_v24 = vadd.f32 %v2076_v0, %v2041_v36 }
 0x599   : > { %v2109_v17 = vpop.f32.mrb[12].mxu0 }
 0x59a   : > { %v2110_v21 = vpop.f32.mrb[13].mxu0 }
 0x59b   : > { %v2111_v22 = vadd.f32 %v2110_v21, %v2109_v17 }
 0x59d   : > { %v1707_v23 = vadd.f32 %v2111_v22, %v1637_v24 }
 0x59f   : > { %v1710_v29 = vmax.f32 %v1707_v23, 0.0 }
 0x5a1   : > { %v1712_v26 = vrot.slane %v1710_v29, 1  ;;  %v1716_v5 = vrot.slane %v1710_v29, 3  ;;  %v1714_v34 = vrot.slane %v1710_v29, 2 }
 0x5a3   : > { %1846 = vmatprep.mubr.f32.mxu1 %v1712_v26  ;;  %1916 = vmatprep.mubr.f32.mxu0 %v1716_v5 }
 0x5a4   : > { %1847 = vmatmul.mubr.f32.vlgmr.msra.gmra.mrb[10].mxu1 %v1710_v29  ;;  %1917 = vmatmul.mubr.f32.vlgmr.msra.gmra.mrb[14].mxu0 %v1714_v34 }
 0x677   : > { %v2144_v31 = vpop.f32.mrb[10].mxu1  ;;  %v2179_v32 = vpop.f32.mrb[14].mxu0 }
 0x678   : > { %v2145_v37 = vpop.f32.mrb[11].mxu1  ;;  %v2180_v38 = vpop.f32.mrb[15].mxu0 }
 0x679   : > { %v2146_v35 = vadd.f32 %v2145_v37, %v2144_v31  ;;  %v2181_v27 = vadd.f32 %v2180_v38, %v2179_v32 }
 0x67b   : > { %v1919_v40 = vadd.f32 %v2181_v27, %v2146_v35 }
 0x67d   : > { %1922 = vst [vmem:[%s271_s20] sm:$0x1] %v1919_v40 }
 0x67e   : > { %2788 = shalt.err (!%p2785_p3)
}
 0x67f   : > { %s2789_s19 = scalar_lea.hbm %s4641_s23, 16  ;;  %s2793_s16 = scalar_lea.hbm %s4690_s7, 32 }
 0x680   : > { %p2790_p4 = scmp.ne.s32.totalorder %s4641_s23, %s2789_s19  ;;  %p2794_p9 = scmp.lt.u32.totalorder %s4641_s23, %s4690_s7 }
 0x681   : > { %p2795_p10 = scmp.lt.u32.totalorder %s2793_s16, %s2789_s19  ;;  %p2797_p12 = scmp.lt.u32.totalorder %s2789_s19, %s4641_s23 }
 0x682   : > { %p2791_p7 = pnand %p2790_p4, %p2920_p5 }
 0x683   : > { %p2796_p11 = por %p2795_p10, %p2794_p9 }
 0x684   : > { %p2792_p8 = pneg %p2791_p7 }
 0x685   : > { %p2798_p13 = por %p2797_p12, %p2796_p11 }
 0x687   : > { %p2799_p0 = pnand %p2798_p13, %p2792_p8 }
 0x689   : > { %2802 = shalt.err (!%p2799_p0)
}
 0x68a   : > { %2734 = dma.vmem_to_hbm [thread:$0]  (%p2920_p5), %s4643_s17, 16, %s4641_s23, %s1924_s29  }
 0x68b PF: > { %p2740_p1 = scmp.ge.s32.totalorder %s2837_s27, 2  ;;  %s1948_s21 = sand.u32 1, %s2825_s24  }
 0x68c   : > { %s1949_s22 = scalar_lea.sflag [#allocation3], %s1948_s21 }
 0x68d   : > { %p2737_p2 = pnand %p2740_p1, %p2924_p6 }
 0x68f   : > { %2820 = dma.done.wait (!%p2737_p2), %s1949_s22, 16  }
 0x690   : > { %2822 = vsyncadd (!%p2737_p2), %s1949_s22, 4294967280  ;;  %p17_p3 = scmp.ge.s32.totalorder %s2907_s30, 4   ;;  %s4695_s24 = smov %s2829_s25 }
 0x691   : > { %s4696_s25 = smov %s2833_s26  ;;  %s4697_s26 = smov %s2918_s10 }
 0x692   : > { %s4698_s27 = smov %s2907_s30  ;;  %19 = sbr.rel (!%p17_p3) target bundleno = 3 (0x3), region = 83 }
 0x699   :  { %1953 = vsyncpa [#allocation3], 1 }
 0x69a   :  { %1955 = vsyncpa [#allocation3 + $0x1], 1 }

</bundles_post_ra>
